<compile_context>
chip_gen: v5e
topology: v5e:2x2
jax: 0.10.0
libtpu: 0.0.40
codegen_flags: <defaults>
</compile_context>

<pallas_src>
import jax
import jax.numpy as jnp
from jax.experimental import pallas as pl

# ----------------------------- config ---------------------------------------
N_LAYERS = 2
N_HEADS = 4
HIDDEN = 32
HEAD_DIM = HIDDEN // N_HEADS
INTERMEDIATE = 64
SEQ = 8
BATCH = 2
LN_EPS = 1e-12


# ----------------------------- kernel ---------------------------------------
def _layernorm(x, gamma, beta):
    mean = jnp.mean(x, axis=-1, keepdims=True)
    var = jnp.mean((x - mean) ** 2, axis=-1, keepdims=True)
    return (x - mean) * jax.lax.rsqrt(var + LN_EPS) * gamma + beta


def bert_encoder_kernel(
    emb_ref, mask_ref,
    wqkv_ref, bqkv_ref, wo_ref, bo_ref, ln1_g_ref, ln1_b_ref,
    wi_ref, bi_ref, wo2_ref, bo2_ref, ln2_g_ref, ln2_b_ref,
    out_ref,
):
    H = HIDDEN
    B, S = BATCH, SEQ

    x = emb_ref[...]                                   # (B*S, H), stays in vregs
    # Hoisted once for the whole encoder: additive key mask broadcast over
    # queries.  (B, 1, S) -> (B, S, S); shared by every head of every layer.
    mask_b = jnp.broadcast_to(mask_ref[...], (B, S, S))
    scale = 1.0 / (HEAD_DIM ** 0.5)

    # Static unroll over layers (N_LAYERS = 2): weights indexed with a static
    # leading-axis index, activations carried as a Python loop value.
    for l in range(N_LAYERS):
        # --- fused QKV projection: one (B*S, H) @ (H, 3H) matmul ------------
        qkv = jnp.dot(x, wqkv_ref[l],
                      preferred_element_type=jnp.float32) + bqkv_ref[l]
        q = qkv[:, 0 * H:1 * H].reshape(B, S, H)
        k = qkv[:, 1 * H:2 * H].reshape(B, S, H)
        v = qkv[:, 2 * H:3 * H].reshape(B, S, H)

        # --- multi-head attention (heads unrolled, batched over B) ----------
        ctxs = []
        for h in range(N_HEADS):
            sl = slice(h * HEAD_DIM, (h + 1) * HEAD_DIM)
            qh, kh, vh = q[..., sl], k[..., sl], v[..., sl]      # (B, S, dh)
            s = jnp.einsum("bqd,bkd->bqk", qh, kh,
                           preferred_element_type=jnp.float32) * scale
            s = s + mask_b
            s = s - jnp.max(s, axis=-1, keepdims=True)
            p = jnp.exp(s)
            p = p / jnp.sum(p, axis=-1, keepdims=True)           # exact softmax
            ctxs.append(jnp.einsum("bqk,bkd->bqd", p, vh,
                                   preferred_element_type=jnp.float32))
        # Join head contexts in registers; single output projection matmul.
        ctx = jnp.concatenate(ctxs, axis=-1).reshape(B * S, H)
        attn = jnp.dot(ctx, wo_ref[l],
                       preferred_element_type=jnp.float32) + bo_ref[l]
        h1 = _layernorm(attn + x, ln1_g_ref[l], ln1_b_ref[l])

        # --- feed-forward (BERT tanh-approx gelu) ----------------------------
        inter = jnp.dot(h1, wi_ref[l],
                        preferred_element_type=jnp.float32) + bi_ref[l]
        inter = jax.nn.gelu(inter, approximate=True)
        ffn = jnp.dot(inter, wo2_ref[l],
                      preferred_element_type=jnp.float32) + bo2_ref[l]
        x = _layernorm(ffn + h1, ln2_g_ref[l], ln2_b_ref[l])

    out_ref[...] = x                                    # (B*S, H)


# ----------------------------- wrapper ---------------------------------------
def _stack(layer_params, name):
    return jnp.stack([p[name] for p in layer_params], axis=0)


@jax.jit
def bert_encoder_pallas(emb, mask, layer_params):
    B, S, H = emb.shape

    # Stack per-layer weights along a leading layer axis; fuse Q/K/V.
    wqkv = jnp.stack(
        [jnp.concatenate([p["wq"], p["wk"], p["wv"]], axis=1) for p in layer_params])
    bqkv = jnp.stack(
        [jnp.concatenate([p["bq"], p["bk"], p["bv"]], axis=1) for p in layer_params])
    wo, bo = _stack(layer_params, "wo"), _stack(layer_params, "bo")
    ln1_g, ln1_b = _stack(layer_params, "ln1_g"), _stack(layer_params, "ln1_b")
    wi, bi = _stack(layer_params, "wi"), _stack(layer_params, "bi")
    wo2, bo2 = _stack(layer_params, "wo2"), _stack(layer_params, "bo2")
    ln2_g, ln2_b = _stack(layer_params, "ln2_g"), _stack(layer_params, "ln2_b")

    # No grid: every operand (total well under 128 KiB) goes whole into VMEM
    # once; layers are unrolled inside the kernel.
    out2d = pl.pallas_call(
        bert_encoder_kernel,
        out_shape=jax.ShapeDtypeStruct((B * S, H), jnp.float32),
    )(emb.reshape(B * S, H), mask,
      wqkv, bqkv, wo, bo, ln1_g, ln1_b,
      wi, bi, wo2, bo2, ln2_g, ln2_b)
    return out2d.reshape(B, S, H)


# ----------------------------- reference (pure JAX) --------------------------
def _ref_layer(x, mask, p):
    # x: (B, S, H), mask: (B, 1, S) additive
    q = x @ p["wq"] + p["bq"]
    k = x @ p["wk"] + p["bk"]
    v = x @ p["wv"] + p["bv"]
    scale = 1.0 / (HEAD_DIM ** 0.5)
    ctxs = []
    for h in range(N_HEADS):
        sl = slice(h * HEAD_DIM, (h + 1) * HEAD_DIM)
        s = jnp.einsum("bqd,bkd->bqk", q[..., sl], k[..., sl]) * scale + mask
        pmat = jax.nn.softmax(s, axis=-1)
        ctxs.append(jnp.einsum("bqk,bkd->bqd", pmat, v[..., sl]))
    ctx = jnp.concatenate(ctxs, axis=-1)
    attn = ctx @ p["wo"] + p["bo"]

    def ln(y, g, b):
        m = jnp.mean(y, -1, keepdims=True)
        va = jnp.mean((y - m) ** 2, -1, keepdims=True)
        return (y - m) * jax.lax.rsqrt(va + LN_EPS) * g + b

    h1 = ln(attn + x, p["ln1_g"], p["ln1_b"])
    inter = jax.nn.gelu(h1 @ p["wi"] + p["bi"], approximate=True)
    return ln(inter @ p["wo2"] + p["bo2"] + h1, p["ln2_g"], p["ln2_b"])


def bert_encoder_ref(emb, mask, layer_params):
    x = emb
    for p in layer_params:
        x = _ref_layer(x, mask, p)
    return x


# ----------------------------- params ---------------------------------------
def init_layer_params(key):
    ks = jax.random.split(key, 6)

    def dense(k, fin, fout):
        w = 0.02 * jax.random.normal(k, (fin, fout), jnp.float32)
        b = 0.01 * jax.random.normal(jax.random.fold_in(k, 7), (1, fout), jnp.float32)
        return w, b

    wq, bq = dense(ks[0], HIDDEN, HIDDEN)
    wk, bk = dense(ks[1], HIDDEN, HIDDEN)
    wv, bv = dense(ks[2], HIDDEN, HIDDEN)
    wo, bo = dense(ks[3], HIDDEN, HIDDEN)
    wi, bi = dense(ks[4], HIDDEN, INTERMEDIATE)
    wo2, bo2 = dense(ks[5], INTERMEDIATE, HIDDEN)
    ones = jnp.ones((1, HIDDEN), jnp.float32)
    zeros = jnp.zeros((1, HIDDEN), jnp.float32)
    return dict(
        wq=wq, bq=bq, wk=wk, bk=bk, wv=wv, bv=bv, wo=wo, bo=bo,
        ln1_g=ones, ln1_b=zeros,
        wi=wi, bi=bi, wo2=wo2, bo2=bo2,
        ln2_g=ones, ln2_b=zeros,
    )


# ----------------------------- main ------------------------------------------
if __name__ == "__main__":
    key = jax.random.PRNGKey(0)
    k_emb, k_params = jax.random.split(key)

    emb = jax.random.normal(k_emb, (BATCH, SEQ, HIDDEN), jnp.float32)
    # Last token of batch 1 is padding -> additive mask (B, 1, S).
    pad = jnp.array([[1] * SEQ, [1] * (SEQ - 1) + [0]], jnp.float32)
    att_mask = ((1.0 - pad) * -1e9)[:, None, :]          # (B, 1, S)

    layer_params = [
        init_layer_params(jax.random.fold_in(k_params, i)) for i in range(N_LAYERS)
    ]

    out = bert_encoder_pallas(emb, att_mask, layer_params)
    out = jax.block_until_ready(out)

    ref = bert_encoder_ref(emb, att_mask, layer_params)
    assert out.shape == (BATCH, SEQ, HIDDEN)
    assert jnp.allclose(out, ref, atol=1e-4, rtol=1e-4), (
        f"max abs diff {jnp.max(jnp.abs(out - ref))}")

    print("KERNEL_OK")
</pallas_src>

<mosaic_0001>
module attributes {stable_mosaic.version = 11 : i64} {
  func.func @bert_encoder_kernel(%arg0: memref<16x32xf32, #tpu.memory_space<vmem>>, %arg1: memref<2x1x8xf32, #tpu.memory_space<vmem>>, %arg2: memref<2x32x96xf32, #tpu.memory_space<vmem>>, %arg3: memref<2x1x96xf32, #tpu.memory_space<vmem>>, %arg4: memref<2x32x32xf32, #tpu.memory_space<vmem>>, %arg5: memref<2x1x32xf32, #tpu.memory_space<vmem>>, %arg6: memref<2x1x32xf32, #tpu.memory_space<vmem>>, %arg7: memref<2x1x32xf32, #tpu.memory_space<vmem>>, %arg8: memref<2x32x64xf32, #tpu.memory_space<vmem>>, %arg9: memref<2x1x64xf32, #tpu.memory_space<vmem>>, %arg10: memref<2x64x32xf32, #tpu.memory_space<vmem>>, %arg11: memref<2x1x32xf32, #tpu.memory_space<vmem>>, %arg12: memref<2x1x32xf32, #tpu.memory_space<vmem>>, %arg13: memref<2x1x32xf32, #tpu.memory_space<vmem>>, %arg14: memref<16x32xf32, #tpu.memory_space<vmem>>) attributes {dimension_semantics = [], scalar_prefetch = 0 : i64, scratch_operands = 0 : i64, tpu.core_type = #tpu.core_type<tc>} {
    %c0 = arith.constant 0 : index
    %c0_0 = arith.constant 0 : index
    %0 = vector.load %arg0[%c0, %c0_0] : memref<16x32xf32, #tpu.memory_space<vmem>>, vector<16x32xf32>
    %c0_1 = arith.constant 0 : index
    %c0_2 = arith.constant 0 : index
    %c0_3 = arith.constant 0 : index
    %1 = vector.load %arg1[%c0_1, %c0_2, %c0_3] : memref<2x1x8xf32, #tpu.memory_space<vmem>>, vector<2x1x8xf32>
    %2 = vector.shape_cast %1 : vector<2x1x8xf32> to vector<2x1x8xf32>
    %3 = vector.broadcast %2 : vector<2x1x8xf32> to vector<2x8x8xf32>
    %c0_4 = arith.constant 0 : index
    %c0_5 = arith.constant 0 : index
    %c0_6 = arith.constant 0 : index
    %4 = vector.load %arg2[%c0_4, %c0_5, %c0_6] : memref<2x32x96xf32, #tpu.memory_space<vmem>>, vector<1x32x96xf32>
    %5 = vector.shape_cast %4 : vector<1x32x96xf32> to vector<32x96xf32>
    %cst = arith.constant dense<0.000000e+00> : vector<16x96xf32>
    %6 = tpu.matmul %0, %5, %cst {dimension_numbers = #tpu.dot_dimension_numbers<[1], [0], [0], [1], [0, 0, 1, 1], [], []>} : vector<16x32xf32>, vector<32x96xf32>, vector<16x96xf32> -> vector<16x96xf32>
    %c0_7 = arith.constant 0 : index
    %c0_8 = arith.constant 0 : index
    %c0_9 = arith.constant 0 : index
    %7 = vector.load %arg3[%c0_7, %c0_8, %c0_9] : memref<2x1x96xf32, #tpu.memory_space<vmem>>, vector<1x1x96xf32>
    %8 = vector.shape_cast %7 : vector<1x1x96xf32> to vector<1x96xf32>
    %9 = vector.broadcast %8 : vector<1x96xf32> to vector<16x96xf32>
    %10 = arith.addf %6, %9 : vector<16x96xf32>
    %11 = vector.extract_strided_slice %10 {offsets = [0, 0], sizes = [16, 32], strides = [1, 1]} : vector<16x96xf32> to vector<16x32xf32>
    %12 = vector.shape_cast %11 : vector<16x32xf32> to vector<2x8x32xf32>
    %13 = vector.extract_strided_slice %10 {offsets = [0, 32], sizes = [16, 32], strides = [1, 1]} : vector<16x96xf32> to vector<16x32xf32>
    %14 = vector.shape_cast %13 : vector<16x32xf32> to vector<2x8x32xf32>
    %15 = vector.extract_strided_slice %10 {offsets = [0, 64], sizes = [16, 32], strides = [1, 1]} : vector<16x96xf32> to vector<16x32xf32>
    %16 = vector.shape_cast %15 : vector<16x32xf32> to vector<2x8x32xf32>
    %17 = vector.extract_strided_slice %12 {offsets = [0, 0, 0], sizes = [2, 8, 8], strides = [1, 1, 1]} : vector<2x8x32xf32> to vector<2x8x8xf32>
    %18 = vector.extract_strided_slice %14 {offsets = [0, 0, 0], sizes = [2, 8, 8], strides = [1, 1, 1]} : vector<2x8x32xf32> to vector<2x8x8xf32>
    %19 = vector.extract_strided_slice %16 {offsets = [0, 0, 0], sizes = [2, 8, 8], strides = [1, 1, 1]} : vector<2x8x32xf32> to vector<2x8x8xf32>
    "tpu.trace_start"() <{level = 10 : i32, message = "bqd,bkd->bqk"}> : () -> ()
    %cst_10 = arith.constant dense<0.000000e+00> : vector<2x8x8xf32>
    %20 = tpu.matmul %17, %18, %cst_10 {dimension_numbers = #tpu.dot_dimension_numbers<[2], [2], [1], [1], [0, 0, 0, 1, 1, 1], [0], [0]>} : vector<2x8x8xf32>, vector<2x8x8xf32>, vector<2x8x8xf32> -> vector<2x8x8xf32>
    "tpu.trace_stop"() : () -> ()
    %cst_11 = arith.constant 0.353553385 : f32
    %21 = vector.broadcast %cst_11 : f32 to vector<2x8x8xf32>
    %22 = arith.mulf %20, %21 : vector<2x8x8xf32>
    %23 = arith.addf %22, %3 : vector<2x8x8xf32>
    %cst_12 = arith.constant dense<0xFF800000> : vector<2x8xf32>
    %24 = vector.multi_reduction <maximumf>, %23, %cst_12 [2] : vector<2x8x8xf32> to vector<2x8xf32>
    %25 = vector.shape_cast %24 : vector<2x8xf32> to vector<2x8x1xf32>
    %26 = vector.broadcast %25 : vector<2x8x1xf32> to vector<2x8x8xf32>
    %27 = arith.subf %23, %26 : vector<2x8x8xf32>
    %28 = math.exp %27 : vector<2x8x8xf32>
    %cst_13 = arith.constant dense<0.000000e+00> : vector<2x8xf32>
    %29 = vector.multi_reduction <add>, %28, %cst_13 [2] : vector<2x8x8xf32> to vector<2x8xf32>
    %30 = vector.shape_cast %29 : vector<2x8xf32> to vector<2x8x1xf32>
    %31 = vector.broadcast %30 : vector<2x8x1xf32> to vector<2x8x8xf32>
    %32 = arith.divf %28, %31 : vector<2x8x8xf32>
    "tpu.trace_start"() <{level = 10 : i32, message = "bqk,bkd->bqd"}> : () -> ()
    %cst_14 = arith.constant dense<0.000000e+00> : vector<2x8x8xf32>
    %33 = tpu.matmul %32, %19, %cst_14 {dimension_numbers = #tpu.dot_dimension_numbers<[2], [1], [1], [2], [0, 0, 0, 1, 1, 2], [0], [0]>} : vector<2x8x8xf32>, vector<2x8x8xf32>, vector<2x8x8xf32> -> vector<2x8x8xf32>
    "tpu.trace_stop"() : () -> ()
    %34 = vector.extract_strided_slice %12 {offsets = [0, 0, 8], sizes = [2, 8, 8], strides = [1, 1, 1]} : vector<2x8x32xf32> to vector<2x8x8xf32>
    %35 = vector.extract_strided_slice %14 {offsets = [0, 0, 8], sizes = [2, 8, 8], strides = [1, 1, 1]} : vector<2x8x32xf32> to vector<2x8x8xf32>
    %36 = vector.extract_strided_slice %16 {offsets = [0, 0, 8], sizes = [2, 8, 8], strides = [1, 1, 1]} : vector<2x8x32xf32> to vector<2x8x8xf32>
    "tpu.trace_start"() <{level = 10 : i32, message = "bqd,bkd->bqk"}> : () -> ()
    %cst_15 = arith.constant dense<0.000000e+00> : vector<2x8x8xf32>
    %37 = tpu.matmul %34, %35, %cst_15 {dimension_numbers = #tpu.dot_dimension_numbers<[2], [2], [1], [1], [0, 0, 0, 1, 1, 1], [0], [0]>} : vector<2x8x8xf32>, vector<2x8x8xf32>, vector<2x8x8xf32> -> vector<2x8x8xf32>
    "tpu.trace_stop"() : () -> ()
    %cst_16 = arith.constant 0.353553385 : f32
    %38 = vector.broadcast %cst_16 : f32 to vector<2x8x8xf32>
    %39 = arith.mulf %37, %38 : vector<2x8x8xf32>
    %40 = arith.addf %39, %3 : vector<2x8x8xf32>
    %cst_17 = arith.constant dense<0xFF800000> : vector<2x8xf32>
    %41 = vector.multi_reduction <maximumf>, %40, %cst_17 [2] : vector<2x8x8xf32> to vector<2x8xf32>
    %42 = vector.shape_cast %41 : vector<2x8xf32> to vector<2x8x1xf32>
    %43 = vector.broadcast %42 : vector<2x8x1xf32> to vector<2x8x8xf32>
    %44 = arith.subf %40, %43 : vector<2x8x8xf32>
    %45 = math.exp %44 : vector<2x8x8xf32>
    %cst_18 = arith.constant dense<0.000000e+00> : vector<2x8xf32>
    %46 = vector.multi_reduction <add>, %45, %cst_18 [2] : vector<2x8x8xf32> to vector<2x8xf32>
    %47 = vector.shape_cast %46 : vector<2x8xf32> to vector<2x8x1xf32>
    %48 = vector.broadcast %47 : vector<2x8x1xf32> to vector<2x8x8xf32>
    %49 = arith.divf %45, %48 : vector<2x8x8xf32>
    "tpu.trace_start"() <{level = 10 : i32, message = "bqk,bkd->bqd"}> : () -> ()
    %cst_19 = arith.constant dense<0.000000e+00> : vector<2x8x8xf32>
    %50 = tpu.matmul %49, %36, %cst_19 {dimension_numbers = #tpu.dot_dimension_numbers<[2], [1], [1], [2], [0, 0, 0, 1, 1, 2], [0], [0]>} : vector<2x8x8xf32>, vector<2x8x8xf32>, vector<2x8x8xf32> -> vector<2x8x8xf32>
    "tpu.trace_stop"() : () -> ()
    %51 = vector.extract_strided_slice %12 {offsets = [0, 0, 16], sizes = [2, 8, 8], strides = [1, 1, 1]} : vector<2x8x32xf32> to vector<2x8x8xf32>
    %52 = vector.extract_strided_slice %14 {offsets = [0, 0, 16], sizes = [2, 8, 8], strides = [1, 1, 1]} : vector<2x8x32xf32> to vector<2x8x8xf32>
    %53 = vector.extract_strided_slice %16 {offsets = [0, 0, 16], sizes = [2, 8, 8], strides = [1, 1, 1]} : vector<2x8x32xf32> to vector<2x8x8xf32>
    "tpu.trace_start"() <{level = 10 : i32, message = "bqd,bkd->bqk"}> : () -> ()
    %cst_20 = arith.constant dense<0.000000e+00> : vector<2x8x8xf32>
    %54 = tpu.matmul %51, %52, %cst_20 {dimension_numbers = #tpu.dot_dimension_numbers<[2], [2], [1], [1], [0, 0, 0, 1, 1, 1], [0], [0]>} : vector<2x8x8xf32>, vector<2x8x8xf32>, vector<2x8x8xf32> -> vector<2x8x8xf32>
    "tpu.trace_stop"() : () -> ()
    %cst_21 = arith.constant 0.353553385 : f32
    %55 = vector.broadcast %cst_21 : f32 to vector<2x8x8xf32>
    %56 = arith.mulf %54, %55 : vector<2x8x8xf32>
    %57 = arith.addf %56, %3 : vector<2x8x8xf32>
    %cst_22 = arith.constant dense<0xFF800000> : vector<2x8xf32>
    %58 = vector.multi_reduction <maximumf>, %57, %cst_22 [2] : vector<2x8x8xf32> to vector<2x8xf32>
    %59 = vector.shape_cast %58 : vector<2x8xf32> to vector<2x8x1xf32>
    %60 = vector.broadcast %59 : vector<2x8x1xf32> to vector<2x8x8xf32>
    %61 = arith.subf %57, %60 : vector<2x8x8xf32>
    %62 = math.exp %61 : vector<2x8x8xf32>
    %cst_23 = arith.constant dense<0.000000e+00> : vector<2x8xf32>
    %63 = vector.multi_reduction <add>, %62, %cst_23 [2] : vector<2x8x8xf32> to vector<2x8xf32>
    %64 = vector.shape_cast %63 : vector<2x8xf32> to vector<2x8x1xf32>
    %65 = vector.broadcast %64 : vector<2x8x1xf32> to vector<2x8x8xf32>
    %66 = arith.divf %62, %65 : vector<2x8x8xf32>
    "tpu.trace_start"() <{level = 10 : i32, message = "bqk,bkd->bqd"}> : () -> ()
    %cst_24 = arith.constant dense<0.000000e+00> : vector<2x8x8xf32>
    %67 = tpu.matmul %66, %53, %cst_24 {dimension_numbers = #tpu.dot_dimension_numbers<[2], [1], [1], [2], [0, 0, 0, 1, 1, 2], [0], [0]>} : vector<2x8x8xf32>, vector<2x8x8xf32>, vector<2x8x8xf32> -> vector<2x8x8xf32>
    "tpu.trace_stop"() : () -> ()
    %68 = vector.extract_strided_slice %12 {offsets = [0, 0, 24], sizes = [2, 8, 8], strides = [1, 1, 1]} : vector<2x8x32xf32> to vector<2x8x8xf32>
    %69 = vector.extract_strided_slice %14 {offsets = [0, 0, 24], sizes = [2, 8, 8], strides = [1, 1, 1]} : vector<2x8x32xf32> to vector<2x8x8xf32>
    %70 = vector.extract_strided_slice %16 {offsets = [0, 0, 24], sizes = [2, 8, 8], strides = [1, 1, 1]} : vector<2x8x32xf32> to vector<2x8x8xf32>
    "tpu.trace_start"() <{level = 10 : i32, message = "bqd,bkd->bqk"}> : () -> ()
    %cst_25 = arith.constant dense<0.000000e+00> : vector<2x8x8xf32>
    %71 = tpu.matmul %68, %69, %cst_25 {dimension_numbers = #tpu.dot_dimension_numbers<[2], [2], [1], [1], [0, 0, 0, 1, 1, 1], [0], [0]>} : vector<2x8x8xf32>, vector<2x8x8xf32>, vector<2x8x8xf32> -> vector<2x8x8xf32>
    "tpu.trace_stop"() : () -> ()
    %cst_26 = arith.constant 0.353553385 : f32
    %72 = vector.broadcast %cst_26 : f32 to vector<2x8x8xf32>
    %73 = arith.mulf %71, %72 : vector<2x8x8xf32>
    %74 = arith.addf %73, %3 : vector<2x8x8xf32>
    %cst_27 = arith.constant dense<0xFF800000> : vector<2x8xf32>
    %75 = vector.multi_reduction <maximumf>, %74, %cst_27 [2] : vector<2x8x8xf32> to vector<2x8xf32>
    %76 = vector.shape_cast %75 : vector<2x8xf32> to vector<2x8x1xf32>
    %77 = vector.broadcast %76 : vector<2x8x1xf32> to vector<2x8x8xf32>
    %78 = arith.subf %74, %77 : vector<2x8x8xf32>
    %79 = math.exp %78 : vector<2x8x8xf32>
    %cst_28 = arith.constant dense<0.000000e+00> : vector<2x8xf32>
    %80 = vector.multi_reduction <add>, %79, %cst_28 [2] : vector<2x8x8xf32> to vector<2x8xf32>
    %81 = vector.shape_cast %80 : vector<2x8xf32> to vector<2x8x1xf32>
    %82 = vector.broadcast %81 : vector<2x8x1xf32> to vector<2x8x8xf32>
    %83 = arith.divf %79, %82 : vector<2x8x8xf32>
    "tpu.trace_start"() <{level = 10 : i32, message = "bqk,bkd->bqd"}> : () -> ()
    %cst_29 = arith.constant dense<0.000000e+00> : vector<2x8x8xf32>
    %84 = tpu.matmul %83, %70, %cst_29 {dimension_numbers = #tpu.dot_dimension_numbers<[2], [1], [1], [2], [0, 0, 0, 1, 1, 2], [0], [0]>} : vector<2x8x8xf32>, vector<2x8x8xf32>, vector<2x8x8xf32> -> vector<2x8x8xf32>
    "tpu.trace_stop"() : () -> ()
    %85 = tpu.concatenate %33, %50, %67, %84 in 2 : vector<2x8x8xf32>, vector<2x8x8xf32>, vector<2x8x8xf32>, vector<2x8x8xf32> -> vector<2x8x32xf32>
    %86 = vector.shape_cast %85 : vector<2x8x32xf32> to vector<16x32xf32>
    %c0_30 = arith.constant 0 : index
    %c0_31 = arith.constant 0 : index
    %c0_32 = arith.constant 0 : index
    %87 = vector.load %arg4[%c0_30, %c0_31, %c0_32] : memref<2x32x32xf32, #tpu.memory_space<vmem>>, vector<1x32x32xf32>
    %88 = vector.shape_cast %87 : vector<1x32x32xf32> to vector<32x32xf32>
    %cst_33 = arith.constant dense<0.000000e+00> : vector<16x32xf32>
    %89 = tpu.matmul %86, %88, %cst_33 {dimension_numbers = #tpu.dot_dimension_numbers<[1], [0], [0], [1], [0, 0, 1, 1], [], []>} : vector<16x32xf32>, vector<32x32xf32>, vector<16x32xf32> -> vector<16x32xf32>
    %c0_34 = arith.constant 0 : index
    %c0_35 = arith.constant 0 : index
    %c0_36 = arith.constant 0 : index
    %90 = vector.load %arg5[%c0_34, %c0_35, %c0_36] : memref<2x1x32xf32, #tpu.memory_space<vmem>>, vector<1x1x32xf32>
    %91 = vector.shape_cast %90 : vector<1x1x32xf32> to vector<1x32xf32>
    %92 = vector.broadcast %91 : vector<1x32xf32> to vector<16x32xf32>
    %93 = arith.addf %89, %92 : vector<16x32xf32>
    %94 = arith.addf %93, %0 : vector<16x32xf32>
    %c0_37 = arith.constant 0 : index
    %c0_38 = arith.constant 0 : index
    %c0_39 = arith.constant 0 : index
    %95 = vector.load %arg6[%c0_37, %c0_38, %c0_39] : memref<2x1x32xf32, #tpu.memory_space<vmem>>, vector<1x1x32xf32>
    %96 = vector.shape_cast %95 : vector<1x1x32xf32> to vector<1x32xf32>
    %c0_40 = arith.constant 0 : index
    %c0_41 = arith.constant 0 : index
    %c0_42 = arith.constant 0 : index
    %97 = vector.load %arg7[%c0_40, %c0_41, %c0_42] : memref<2x1x32xf32, #tpu.memory_space<vmem>>, vector<1x1x32xf32>
    %98 = vector.shape_cast %97 : vector<1x1x32xf32> to vector<1x32xf32>
    %cst_43 = arith.constant dense<0.000000e+00> : vector<16xf32>
    %99 = vector.multi_reduction <add>, %94, %cst_43 [1] : vector<16x32xf32> to vector<16xf32>
    %100 = vector.shape_cast %99 : vector<16xf32> to vector<16x1xf32>
    %cst_44 = arith.constant 3.200000e+01 : f32
    %101 = vector.broadcast %cst_44 : f32 to vector<16x1xf32>
    %102 = arith.divf %100, %101 : vector<16x1xf32>
    %103 = vector.broadcast %102 : vector<16x1xf32> to vector<16x32xf32>
    %104 = arith.subf %94, %103 : vector<16x32xf32>
    %105 = arith.mulf %104, %104 : vector<16x32xf32>
    %cst_45 = arith.constant dense<0.000000e+00> : vector<16xf32>
    %106 = vector.multi_reduction <add>, %105, %cst_45 [1] : vector<16x32xf32> to vector<16xf32>
    %107 = vector.shape_cast %106 : vector<16xf32> to vector<16x1xf32>
    %cst_46 = arith.constant 3.200000e+01 : f32
    %108 = vector.broadcast %cst_46 : f32 to vector<16x1xf32>
    %109 = arith.divf %107, %108 : vector<16x1xf32>
    %110 = vector.broadcast %102 : vector<16x1xf32> to vector<16x32xf32>
    %111 = arith.subf %94, %110 : vector<16x32xf32>
    %cst_47 = arith.constant 9.99999996E-13 : f32
    %112 = vector.broadcast %cst_47 : f32 to vector<16x1xf32>
    %113 = arith.addf %109, %112 : vector<16x1xf32>
    %114 = math.rsqrt %113 : vector<16x1xf32>
    %115 = vector.broadcast %114 : vector<16x1xf32> to vector<16x32xf32>
    %116 = arith.mulf %111, %115 : vector<16x32xf32>
    %117 = vector.broadcast %96 : vector<1x32xf32> to vector<16x32xf32>
    %118 = arith.mulf %116, %117 : vector<16x32xf32>
    %119 = vector.broadcast %98 : vector<1x32xf32> to vector<16x32xf32>
    %120 = arith.addf %118, %119 : vector<16x32xf32>
    %c0_48 = arith.constant 0 : index
    %c0_49 = arith.constant 0 : index
    %c0_50 = arith.constant 0 : index
    %121 = vector.load %arg8[%c0_48, %c0_49, %c0_50] : memref<2x32x64xf32, #tpu.memory_space<vmem>>, vector<1x32x64xf32>
    %122 = vector.shape_cast %121 : vector<1x32x64xf32> to vector<32x64xf32>
    %cst_51 = arith.constant dense<0.000000e+00> : vector<16x64xf32>
    %123 = tpu.matmul %120, %122, %cst_51 {dimension_numbers = #tpu.dot_dimension_numbers<[1], [0], [0], [1], [0, 0, 1, 1], [], []>} : vector<16x32xf32>, vector<32x64xf32>, vector<16x64xf32> -> vector<16x64xf32>
    %c0_52 = arith.constant 0 : index
    %c0_53 = arith.constant 0 : index
    %c0_54 = arith.constant 0 : index
    %124 = vector.load %arg9[%c0_52, %c0_53, %c0_54] : memref<2x1x64xf32, #tpu.memory_space<vmem>>, vector<1x1x64xf32>
    %125 = vector.shape_cast %124 : vector<1x1x64xf32> to vector<1x64xf32>
    %126 = vector.broadcast %125 : vector<1x64xf32> to vector<16x64xf32>
    %127 = arith.addf %123, %126 : vector<16x64xf32>
    %128 = arith.mulf %127, %127 : vector<16x64xf32>
    %129 = arith.mulf %127, %128 : vector<16x64xf32>
    %cst_55 = arith.constant 4.471500e-02 : f32
    %130 = vector.broadcast %cst_55 : f32 to vector<16x64xf32>
    %131 = arith.mulf %130, %129 : vector<16x64xf32>
    %132 = arith.addf %127, %131 : vector<16x64xf32>
    %cst_56 = arith.constant 0.797884583 : f32
    %133 = vector.broadcast %cst_56 : f32 to vector<16x64xf32>
    %134 = arith.mulf %133, %132 : vector<16x64xf32>
    %135 = math.tanh %134 : vector<16x64xf32>
    %cst_57 = arith.constant 1.000000e+00 : f32
    %136 = vector.broadcast %cst_57 : f32 to vector<16x64xf32>
    %137 = arith.addf %136, %135 : vector<16x64xf32>
    %cst_58 = arith.constant 5.000000e-01 : f32
    %138 = vector.broadcast %cst_58 : f32 to vector<16x64xf32>
    %139 = arith.mulf %138, %137 : vector<16x64xf32>
    %140 = arith.mulf %127, %139 : vector<16x64xf32>
    %c0_59 = arith.constant 0 : index
    %c0_60 = arith.constant 0 : index
    %c0_61 = arith.constant 0 : index
    %141 = vector.load %arg10[%c0_59, %c0_60, %c0_61] : memref<2x64x32xf32, #tpu.memory_space<vmem>>, vector<1x64x32xf32>
    %142 = vector.shape_cast %141 : vector<1x64x32xf32> to vector<64x32xf32>
    %cst_62 = arith.constant dense<0.000000e+00> : vector<16x32xf32>
    %143 = tpu.matmul %140, %142, %cst_62 {dimension_numbers = #tpu.dot_dimension_numbers<[1], [0], [0], [1], [0, 0, 1, 1], [], []>} : vector<16x64xf32>, vector<64x32xf32>, vector<16x32xf32> -> vector<16x32xf32>
    %c0_63 = arith.constant 0 : index
    %c0_64 = arith.constant 0 : index
    %c0_65 = arith.constant 0 : index
    %144 = vector.load %arg11[%c0_63, %c0_64, %c0_65] : memref<2x1x32xf32, #tpu.memory_space<vmem>>, vector<1x1x32xf32>
    %145 = vector.shape_cast %144 : vector<1x1x32xf32> to vector<1x32xf32>
    %146 = vector.broadcast %145 : vector<1x32xf32> to vector<16x32xf32>
    %147 = arith.addf %143, %146 : vector<16x32xf32>
    %148 = arith.addf %147, %120 : vector<16x32xf32>
    %c0_66 = arith.constant 0 : index
    %c0_67 = arith.constant 0 : index
    %c0_68 = arith.constant 0 : index
    %149 = vector.load %arg12[%c0_66, %c0_67, %c0_68] : memref<2x1x32xf32, #tpu.memory_space<vmem>>, vector<1x1x32xf32>
    %150 = vector.shape_cast %149 : vector<1x1x32xf32> to vector<1x32xf32>
    %c0_69 = arith.constant 0 : index
    %c0_70 = arith.constant 0 : index
    %c0_71 = arith.constant 0 : index
    %151 = vector.load %arg13[%c0_69, %c0_70, %c0_71] : memref<2x1x32xf32, #tpu.memory_space<vmem>>, vector<1x1x32xf32>
    %152 = vector.shape_cast %151 : vector<1x1x32xf32> to vector<1x32xf32>
    %cst_72 = arith.constant dense<0.000000e+00> : vector<16xf32>
    %153 = vector.multi_reduction <add>, %148, %cst_72 [1] : vector<16x32xf32> to vector<16xf32>
    %154 = vector.shape_cast %153 : vector<16xf32> to vector<16x1xf32>
    %cst_73 = arith.constant 3.200000e+01 : f32
    %155 = vector.broadcast %cst_73 : f32 to vector<16x1xf32>
    %156 = arith.divf %154, %155 : vector<16x1xf32>
    %157 = vector.broadcast %156 : vector<16x1xf32> to vector<16x32xf32>
    %158 = arith.subf %148, %157 : vector<16x32xf32>
    %159 = arith.mulf %158, %158 : vector<16x32xf32>
    %cst_74 = arith.constant dense<0.000000e+00> : vector<16xf32>
    %160 = vector.multi_reduction <add>, %159, %cst_74 [1] : vector<16x32xf32> to vector<16xf32>
    %161 = vector.shape_cast %160 : vector<16xf32> to vector<16x1xf32>
    %cst_75 = arith.constant 3.200000e+01 : f32
    %162 = vector.broadcast %cst_75 : f32 to vector<16x1xf32>
    %163 = arith.divf %161, %162 : vector<16x1xf32>
    %164 = vector.broadcast %156 : vector<16x1xf32> to vector<16x32xf32>
    %165 = arith.subf %148, %164 : vector<16x32xf32>
    %cst_76 = arith.constant 9.99999996E-13 : f32
    %166 = vector.broadcast %cst_76 : f32 to vector<16x1xf32>
    %167 = arith.addf %163, %166 : vector<16x1xf32>
    %168 = math.rsqrt %167 : vector<16x1xf32>
    %169 = vector.broadcast %168 : vector<16x1xf32> to vector<16x32xf32>
    %170 = arith.mulf %165, %169 : vector<16x32xf32>
    %171 = vector.broadcast %150 : vector<1x32xf32> to vector<16x32xf32>
    %172 = arith.mulf %170, %171 : vector<16x32xf32>
    %173 = vector.broadcast %152 : vector<1x32xf32> to vector<16x32xf32>
    %174 = arith.addf %172, %173 : vector<16x32xf32>
    %c1 = arith.constant 1 : index
    %c0_77 = arith.constant 0 : index
    %c0_78 = arith.constant 0 : index
    %175 = vector.load %arg2[%c1, %c0_77, %c0_78] : memref<2x32x96xf32, #tpu.memory_space<vmem>>, vector<1x32x96xf32>
    %176 = vector.shape_cast %175 : vector<1x32x96xf32> to vector<32x96xf32>
    %cst_79 = arith.constant dense<0.000000e+00> : vector<16x96xf32>
    %177 = tpu.matmul %174, %176, %cst_79 {dimension_numbers = #tpu.dot_dimension_numbers<[1], [0], [0], [1], [0, 0, 1, 1], [], []>} : vector<16x32xf32>, vector<32x96xf32>, vector<16x96xf32> -> vector<16x96xf32>
    %c1_80 = arith.constant 1 : index
    %c0_81 = arith.constant 0 : index
    %c0_82 = arith.constant 0 : index
    %178 = vector.load %arg3[%c1_80, %c0_81, %c0_82] : memref<2x1x96xf32, #tpu.memory_space<vmem>>, vector<1x1x96xf32>
    %179 = vector.shape_cast %178 : vector<1x1x96xf32> to vector<1x96xf32>
    %180 = vector.broadcast %179 : vector<1x96xf32> to vector<16x96xf32>
    %181 = arith.addf %177, %180 : vector<16x96xf32>
    %182 = vector.extract_strided_slice %181 {offsets = [0, 0], sizes = [16, 32], strides = [1, 1]} : vector<16x96xf32> to vector<16x32xf32>
    %183 = vector.shape_cast %182 : vector<16x32xf32> to vector<2x8x32xf32>
    %184 = vector.extract_strided_slice %181 {offsets = [0, 32], sizes = [16, 32], strides = [1, 1]} : vector<16x96xf32> to vector<16x32xf32>
    %185 = vector.shape_cast %184 : vector<16x32xf32> to vector<2x8x32xf32>
    %186 = vector.extract_strided_slice %181 {offsets = [0, 64], sizes = [16, 32], strides = [1, 1]} : vector<16x96xf32> to vector<16x32xf32>
    %187 = vector.shape_cast %186 : vector<16x32xf32> to vector<2x8x32xf32>
    %188 = vector.extract_strided_slice %183 {offsets = [0, 0, 0], sizes = [2, 8, 8], strides = [1, 1, 1]} : vector<2x8x32xf32> to vector<2x8x8xf32>
    %189 = vector.extract_strided_slice %185 {offsets = [0, 0, 0], sizes = [2, 8, 8], strides = [1, 1, 1]} : vector<2x8x32xf32> to vector<2x8x8xf32>
    %190 = vector.extract_strided_slice %187 {offsets = [0, 0, 0], sizes = [2, 8, 8], strides = [1, 1, 1]} : vector<2x8x32xf32> to vector<2x8x8xf32>
    "tpu.trace_start"() <{level = 10 : i32, message = "bqd,bkd->bqk"}> : () -> ()
    %cst_83 = arith.constant dense<0.000000e+00> : vector<2x8x8xf32>
    %191 = tpu.matmul %188, %189, %cst_83 {dimension_numbers = #tpu.dot_dimension_numbers<[2], [2], [1], [1], [0, 0, 0, 1, 1, 1], [0], [0]>} : vector<2x8x8xf32>, vector<2x8x8xf32>, vector<2x8x8xf32> -> vector<2x8x8xf32>
    "tpu.trace_stop"() : () -> ()
    %cst_84 = arith.constant 0.353553385 : f32
    %192 = vector.broadcast %cst_84 : f32 to vector<2x8x8xf32>
    %193 = arith.mulf %191, %192 : vector<2x8x8xf32>
    %194 = arith.addf %193, %3 : vector<2x8x8xf32>
    %cst_85 = arith.constant dense<0xFF800000> : vector<2x8xf32>
    %195 = vector.multi_reduction <maximumf>, %194, %cst_85 [2] : vector<2x8x8xf32> to vector<2x8xf32>
    %196 = vector.shape_cast %195 : vector<2x8xf32> to vector<2x8x1xf32>
    %197 = vector.broadcast %196 : vector<2x8x1xf32> to vector<2x8x8xf32>
    %198 = arith.subf %194, %197 : vector<2x8x8xf32>
    %199 = math.exp %198 : vector<2x8x8xf32>
    %cst_86 = arith.constant dense<0.000000e+00> : vector<2x8xf32>
    %200 = vector.multi_reduction <add>, %199, %cst_86 [2] : vector<2x8x8xf32> to vector<2x8xf32>
    %201 = vector.shape_cast %200 : vector<2x8xf32> to vector<2x8x1xf32>
    %202 = vector.broadcast %201 : vector<2x8x1xf32> to vector<2x8x8xf32>
    %203 = arith.divf %199, %202 : vector<2x8x8xf32>
    "tpu.trace_start"() <{level = 10 : i32, message = "bqk,bkd->bqd"}> : () -> ()
    %cst_87 = arith.constant dense<0.000000e+00> : vector<2x8x8xf32>
    %204 = tpu.matmul %203, %190, %cst_87 {dimension_numbers = #tpu.dot_dimension_numbers<[2], [1], [1], [2], [0, 0, 0, 1, 1, 2], [0], [0]>} : vector<2x8x8xf32>, vector<2x8x8xf32>, vector<2x8x8xf32> -> vector<2x8x8xf32>
    "tpu.trace_stop"() : () -> ()
    %205 = vector.extract_strided_slice %183 {offsets = [0, 0, 8], sizes = [2, 8, 8], strides = [1, 1, 1]} : vector<2x8x32xf32> to vector<2x8x8xf32>
    %206 = vector.extract_strided_slice %185 {offsets = [0, 0, 8], sizes = [2, 8, 8], strides = [1, 1, 1]} : vector<2x8x32xf32> to vector<2x8x8xf32>
    %207 = vector.extract_strided_slice %187 {offsets = [0, 0, 8], sizes = [2, 8, 8], strides = [1, 1, 1]} : vector<2x8x32xf32> to vector<2x8x8xf32>
    "tpu.trace_start"() <{level = 10 : i32, message = "bqd,bkd->bqk"}> : () -> ()
    %cst_88 = arith.constant dense<0.000000e+00> : vector<2x8x8xf32>
    %208 = tpu.matmul %205, %206, %cst_88 {dimension_numbers = #tpu.dot_dimension_numbers<[2], [2], [1], [1], [0, 0, 0, 1, 1, 1], [0], [0]>} : vector<2x8x8xf32>, vector<2x8x8xf32>, vector<2x8x8xf32> -> vector<2x8x8xf32>
    "tpu.trace_stop"() : () -> ()
    %cst_89 = arith.constant 0.353553385 : f32
    %209 = vector.broadcast %cst_89 : f32 to vector<2x8x8xf32>
    %210 = arith.mulf %208, %209 : vector<2x8x8xf32>
    %211 = arith.addf %210, %3 : vector<2x8x8xf32>
    %cst_90 = arith.constant dense<0xFF800000> : vector<2x8xf32>
    %212 = vector.multi_reduction <maximumf>, %211, %cst_90 [2] : vector<2x8x8xf32> to vector<2x8xf32>
    %213 = vector.shape_cast %212 : vector<2x8xf32> to vector<2x8x1xf32>
    %214 = vector.broadcast %213 : vector<2x8x1xf32> to vector<2x8x8xf32>
    %215 = arith.subf %211, %214 : vector<2x8x8xf32>
    %216 = math.exp %215 : vector<2x8x8xf32>
    %cst_91 = arith.constant dense<0.000000e+00> : vector<2x8xf32>
    %217 = vector.multi_reduction <add>, %216, %cst_91 [2] : vector<2x8x8xf32> to vector<2x8xf32>
    %218 = vector.shape_cast %217 : vector<2x8xf32> to vector<2x8x1xf32>
    %219 = vector.broadcast %218 : vector<2x8x1xf32> to vector<2x8x8xf32>
    %220 = arith.divf %216, %219 : vector<2x8x8xf32>
    "tpu.trace_start"() <{level = 10 : i32, message = "bqk,bkd->bqd"}> : () -> ()
    %cst_92 = arith.constant dense<0.000000e+00> : vector<2x8x8xf32>
    %221 = tpu.matmul %220, %207, %cst_92 {dimension_numbers = #tpu.dot_dimension_numbers<[2], [1], [1], [2], [0, 0, 0, 1, 1, 2], [0], [0]>} : vector<2x8x8xf32>, vector<2x8x8xf32>, vector<2x8x8xf32> -> vector<2x8x8xf32>
    "tpu.trace_stop"() : () -> ()
    %222 = vector.extract_strided_slice %183 {offsets = [0, 0, 16], sizes = [2, 8, 8], strides = [1, 1, 1]} : vector<2x8x32xf32> to vector<2x8x8xf32>
    %223 = vector.extract_strided_slice %185 {offsets = [0, 0, 16], sizes = [2, 8, 8], strides = [1, 1, 1]} : vector<2x8x32xf32> to vector<2x8x8xf32>
    %224 = vector.extract_strided_slice %187 {offsets = [0, 0, 16], sizes = [2, 8, 8], strides = [1, 1, 1]} : vector<2x8x32xf32> to vector<2x8x8xf32>
    "tpu.trace_start"() <{level = 10 : i32, message = "bqd,bkd->bqk"}> : () -> ()
    %cst_93 = arith.constant dense<0.000000e+00> : vector<2x8x8xf32>
    %225 = tpu.matmul %222, %223, %cst_93 {dimension_numbers = #tpu.dot_dimension_numbers<[2], [2], [1], [1], [0, 0, 0, 1, 1, 1], [0], [0]>} : vector<2x8x8xf32>, vector<2x8x8xf32>, vector<2x8x8xf32> -> vector<2x8x8xf32>
    "tpu.trace_stop"() : () -> ()
    %cst_94 = arith.constant 0.353553385 : f32
    %226 = vector.broadcast %cst_94 : f32 to vector<2x8x8xf32>
    %227 = arith.mulf %225, %226 : vector<2x8x8xf32>
    %228 = arith.addf %227, %3 : vector<2x8x8xf32>
    %cst_95 = arith.constant dense<0xFF800000> : vector<2x8xf32>
    %229 = vector.multi_reduction <maximumf>, %228, %cst_95 [2] : vector<2x8x8xf32> to vector<2x8xf32>
    %230 = vector.shape_cast %229 : vector<2x8xf32> to vector<2x8x1xf32>
    %231 = vector.broadcast %230 : vector<2x8x1xf32> to vector<2x8x8xf32>
    %232 = arith.subf %228, %231 : vector<2x8x8xf32>
    %233 = math.exp %232 : vector<2x8x8xf32>
    %cst_96 = arith.constant dense<0.000000e+00> : vector<2x8xf32>
    %234 = vector.multi_reduction <add>, %233, %cst_96 [2] : vector<2x8x8xf32> to vector<2x8xf32>
    %235 = vector.shape_cast %234 : vector<2x8xf32> to vector<2x8x1xf32>
    %236 = vector.broadcast %235 : vector<2x8x1xf32> to vector<2x8x8xf32>
    %237 = arith.divf %233, %236 : vector<2x8x8xf32>
    "tpu.trace_start"() <{level = 10 : i32, message = "bqk,bkd->bqd"}> : () -> ()
    %cst_97 = arith.constant dense<0.000000e+00> : vector<2x8x8xf32>
    %238 = tpu.matmul %237, %224, %cst_97 {dimension_numbers = #tpu.dot_dimension_numbers<[2], [1], [1], [2], [0, 0, 0, 1, 1, 2], [0], [0]>} : vector<2x8x8xf32>, vector<2x8x8xf32>, vector<2x8x8xf32> -> vector<2x8x8xf32>
    "tpu.trace_stop"() : () -> ()
    %239 = vector.extract_strided_slice %183 {offsets = [0, 0, 24], sizes = [2, 8, 8], strides = [1, 1, 1]} : vector<2x8x32xf32> to vector<2x8x8xf32>
    %240 = vector.extract_strided_slice %185 {offsets = [0, 0, 24], sizes = [2, 8, 8], strides = [1, 1, 1]} : vector<2x8x32xf32> to vector<2x8x8xf32>
    %241 = vector.extract_strided_slice %187 {offsets = [0, 0, 24], sizes = [2, 8, 8], strides = [1, 1, 1]} : vector<2x8x32xf32> to vector<2x8x8xf32>
    "tpu.trace_start"() <{level = 10 : i32, message = "bqd,bkd->bqk"}> : () -> ()
    %cst_98 = arith.constant dense<0.000000e+00> : vector<2x8x8xf32>
    %242 = tpu.matmul %239, %240, %cst_98 {dimension_numbers = #tpu.dot_dimension_numbers<[2], [2], [1], [1], [0, 0, 0, 1, 1, 1], [0], [0]>} : vector<2x8x8xf32>, vector<2x8x8xf32>, vector<2x8x8xf32> -> vector<2x8x8xf32>
    "tpu.trace_stop"() : () -> ()
    %cst_99 = arith.constant 0.353553385 : f32
    %243 = vector.broadcast %cst_99 : f32 to vector<2x8x8xf32>
    %244 = arith.mulf %242, %243 : vector<2x8x8xf32>
    %245 = arith.addf %244, %3 : vector<2x8x8xf32>
    %cst_100 = arith.constant dense<0xFF800000> : vector<2x8xf32>
    %246 = vector.multi_reduction <maximumf>, %245, %cst_100 [2] : vector<2x8x8xf32> to vector<2x8xf32>
    %247 = vector.shape_cast %246 : vector<2x8xf32> to vector<2x8x1xf32>
    %248 = vector.broadcast %247 : vector<2x8x1xf32> to vector<2x8x8xf32>
    %249 = arith.subf %245, %248 : vector<2x8x8xf32>
    %250 = math.exp %249 : vector<2x8x8xf32>
    %cst_101 = arith.constant dense<0.000000e+00> : vector<2x8xf32>
    %251 = vector.multi_reduction <add>, %250, %cst_101 [2] : vector<2x8x8xf32> to vector<2x8xf32>
    %252 = vector.shape_cast %251 : vector<2x8xf32> to vector<2x8x1xf32>
    %253 = vector.broadcast %252 : vector<2x8x1xf32> to vector<2x8x8xf32>
    %254 = arith.divf %250, %253 : vector<2x8x8xf32>
    "tpu.trace_start"() <{level = 10 : i32, message = "bqk,bkd->bqd"}> : () -> ()
    %cst_102 = arith.constant dense<0.000000e+00> : vector<2x8x8xf32>
    %255 = tpu.matmul %254, %241, %cst_102 {dimension_numbers = #tpu.dot_dimension_numbers<[2], [1], [1], [2], [0, 0, 0, 1, 1, 2], [0], [0]>} : vector<2x8x8xf32>, vector<2x8x8xf32>, vector<2x8x8xf32> -> vector<2x8x8xf32>
    "tpu.trace_stop"() : () -> ()
    %256 = tpu.concatenate %204, %221, %238, %255 in 2 : vector<2x8x8xf32>, vector<2x8x8xf32>, vector<2x8x8xf32>, vector<2x8x8xf32> -> vector<2x8x32xf32>
    %257 = vector.shape_cast %256 : vector<2x8x32xf32> to vector<16x32xf32>
    %c1_103 = arith.constant 1 : index
    %c0_104 = arith.constant 0 : index
    %c0_105 = arith.constant 0 : index
    %258 = vector.load %arg4[%c1_103, %c0_104, %c0_105] : memref<2x32x32xf32, #tpu.memory_space<vmem>>, vector<1x32x32xf32>
    %259 = vector.shape_cast %258 : vector<1x32x32xf32> to vector<32x32xf32>
    %cst_106 = arith.constant dense<0.000000e+00> : vector<16x32xf32>
    %260 = tpu.matmul %257, %259, %cst_106 {dimension_numbers = #tpu.dot_dimension_numbers<[1], [0], [0], [1], [0, 0, 1, 1], [], []>} : vector<16x32xf32>, vector<32x32xf32>, vector<16x32xf32> -> vector<16x32xf32>
    %c1_107 = arith.constant 1 : index
    %c0_108 = arith.constant 0 : index
    %c0_109 = arith.constant 0 : index
    %261 = vector.load %arg5[%c1_107, %c0_108, %c0_109] : memref<2x1x32xf32, #tpu.memory_space<vmem>>, vector<1x1x32xf32>
    %262 = vector.shape_cast %261 : vector<1x1x32xf32> to vector<1x32xf32>
    %263 = vector.broadcast %262 : vector<1x32xf32> to vector<16x32xf32>
    %264 = arith.addf %260, %263 : vector<16x32xf32>
    %265 = arith.addf %264, %174 : vector<16x32xf32>
    %c1_110 = arith.constant 1 : index
    %c0_111 = arith.constant 0 : index
    %c0_112 = arith.constant 0 : index
    %266 = vector.load %arg6[%c1_110, %c0_111, %c0_112] : memref<2x1x32xf32, #tpu.memory_space<vmem>>, vector<1x1x32xf32>
    %267 = vector.shape_cast %266 : vector<1x1x32xf32> to vector<1x32xf32>
    %c1_113 = arith.constant 1 : index
    %c0_114 = arith.constant 0 : index
    %c0_115 = arith.constant 0 : index
    %268 = vector.load %arg7[%c1_113, %c0_114, %c0_115] : memref<2x1x32xf32, #tpu.memory_space<vmem>>, vector<1x1x32xf32>
    %269 = vector.shape_cast %268 : vector<1x1x32xf32> to vector<1x32xf32>
    %cst_116 = arith.constant dense<0.000000e+00> : vector<16xf32>
    %270 = vector.multi_reduction <add>, %265, %cst_116 [1] : vector<16x32xf32> to vector<16xf32>
    %271 = vector.shape_cast %270 : vector<16xf32> to vector<16x1xf32>
    %cst_117 = arith.constant 3.200000e+01 : f32
    %272 = vector.broadcast %cst_117 : f32 to vector<16x1xf32>
    %273 = arith.divf %271, %272 : vector<16x1xf32>
    %274 = vector.broadcast %273 : vector<16x1xf32> to vector<16x32xf32>
    %275 = arith.subf %265, %274 : vector<16x32xf32>
    %276 = arith.mulf %275, %275 : vector<16x32xf32>
    %cst_118 = arith.constant dense<0.000000e+00> : vector<16xf32>
    %277 = vector.multi_reduction <add>, %276, %cst_118 [1] : vector<16x32xf32> to vector<16xf32>
    %278 = vector.shape_cast %277 : vector<16xf32> to vector<16x1xf32>
    %cst_119 = arith.constant 3.200000e+01 : f32
    %279 = vector.broadcast %cst_119 : f32 to vector<16x1xf32>
    %280 = arith.divf %278, %279 : vector<16x1xf32>
    %281 = vector.broadcast %273 : vector<16x1xf32> to vector<16x32xf32>
    %282 = arith.subf %265, %281 : vector<16x32xf32>
    %cst_120 = arith.constant 9.99999996E-13 : f32
    %283 = vector.broadcast %cst_120 : f32 to vector<16x1xf32>
    %284 = arith.addf %280, %283 : vector<16x1xf32>
    %285 = math.rsqrt %284 : vector<16x1xf32>
    %286 = vector.broadcast %285 : vector<16x1xf32> to vector<16x32xf32>
    %287 = arith.mulf %282, %286 : vector<16x32xf32>
    %288 = vector.broadcast %267 : vector<1x32xf32> to vector<16x32xf32>
    %289 = arith.mulf %287, %288 : vector<16x32xf32>
    %290 = vector.broadcast %269 : vector<1x32xf32> to vector<16x32xf32>
    %291 = arith.addf %289, %290 : vector<16x32xf32>
    %c1_121 = arith.constant 1 : index
    %c0_122 = arith.constant 0 : index
    %c0_123 = arith.constant 0 : index
    %292 = vector.load %arg8[%c1_121, %c0_122, %c0_123] : memref<2x32x64xf32, #tpu.memory_space<vmem>>, vector<1x32x64xf32>
    %293 = vector.shape_cast %292 : vector<1x32x64xf32> to vector<32x64xf32>
    %cst_124 = arith.constant dense<0.000000e+00> : vector<16x64xf32>
    %294 = tpu.matmul %291, %293, %cst_124 {dimension_numbers = #tpu.dot_dimension_numbers<[1], [0], [0], [1], [0, 0, 1, 1], [], []>} : vector<16x32xf32>, vector<32x64xf32>, vector<16x64xf32> -> vector<16x64xf32>
    %c1_125 = arith.constant 1 : index
    %c0_126 = arith.constant 0 : index
    %c0_127 = arith.constant 0 : index
    %295 = vector.load %arg9[%c1_125, %c0_126, %c0_127] : memref<2x1x64xf32, #tpu.memory_space<vmem>>, vector<1x1x64xf32>
    %296 = vector.shape_cast %295 : vector<1x1x64xf32> to vector<1x64xf32>
    %297 = vector.broadcast %296 : vector<1x64xf32> to vector<16x64xf32>
    %298 = arith.addf %294, %297 : vector<16x64xf32>
    %299 = arith.mulf %298, %298 : vector<16x64xf32>
    %300 = arith.mulf %298, %299 : vector<16x64xf32>
    %cst_128 = arith.constant 4.471500e-02 : f32
    %301 = vector.broadcast %cst_128 : f32 to vector<16x64xf32>
    %302 = arith.mulf %301, %300 : vector<16x64xf32>
    %303 = arith.addf %298, %302 : vector<16x64xf32>
    %cst_129 = arith.constant 0.797884583 : f32
    %304 = vector.broadcast %cst_129 : f32 to vector<16x64xf32>
    %305 = arith.mulf %304, %303 : vector<16x64xf32>
    %306 = math.tanh %305 : vector<16x64xf32>
    %cst_130 = arith.constant 1.000000e+00 : f32
    %307 = vector.broadcast %cst_130 : f32 to vector<16x64xf32>
    %308 = arith.addf %307, %306 : vector<16x64xf32>
    %cst_131 = arith.constant 5.000000e-01 : f32
    %309 = vector.broadcast %cst_131 : f32 to vector<16x64xf32>
    %310 = arith.mulf %309, %308 : vector<16x64xf32>
    %311 = arith.mulf %298, %310 : vector<16x64xf32>
    %c1_132 = arith.constant 1 : index
    %c0_133 = arith.constant 0 : index
    %c0_134 = arith.constant 0 : index
    %312 = vector.load %arg10[%c1_132, %c0_133, %c0_134] : memref<2x64x32xf32, #tpu.memory_space<vmem>>, vector<1x64x32xf32>
    %313 = vector.shape_cast %312 : vector<1x64x32xf32> to vector<64x32xf32>
    %cst_135 = arith.constant dense<0.000000e+00> : vector<16x32xf32>
    %314 = tpu.matmul %311, %313, %cst_135 {dimension_numbers = #tpu.dot_dimension_numbers<[1], [0], [0], [1], [0, 0, 1, 1], [], []>} : vector<16x64xf32>, vector<64x32xf32>, vector<16x32xf32> -> vector<16x32xf32>
    %c1_136 = arith.constant 1 : index
    %c0_137 = arith.constant 0 : index
    %c0_138 = arith.constant 0 : index
    %315 = vector.load %arg11[%c1_136, %c0_137, %c0_138] : memref<2x1x32xf32, #tpu.memory_space<vmem>>, vector<1x1x32xf32>
    %316 = vector.shape_cast %315 : vector<1x1x32xf32> to vector<1x32xf32>
    %317 = vector.broadcast %316 : vector<1x32xf32> to vector<16x32xf32>
    %318 = arith.addf %314, %317 : vector<16x32xf32>
    %319 = arith.addf %318, %291 : vector<16x32xf32>
    %c1_139 = arith.constant 1 : index
    %c0_140 = arith.constant 0 : index
    %c0_141 = arith.constant 0 : index
    %320 = vector.load %arg12[%c1_139, %c0_140, %c0_141] : memref<2x1x32xf32, #tpu.memory_space<vmem>>, vector<1x1x32xf32>
    %321 = vector.shape_cast %320 : vector<1x1x32xf32> to vector<1x32xf32>
    %c1_142 = arith.constant 1 : index
    %c0_143 = arith.constant 0 : index
    %c0_144 = arith.constant 0 : index
    %322 = vector.load %arg13[%c1_142, %c0_143, %c0_144] : memref<2x1x32xf32, #tpu.memory_space<vmem>>, vector<1x1x32xf32>
    %323 = vector.shape_cast %322 : vector<1x1x32xf32> to vector<1x32xf32>
    %cst_145 = arith.constant dense<0.000000e+00> : vector<16xf32>
    %324 = vector.multi_reduction <add>, %319, %cst_145 [1] : vector<16x32xf32> to vector<16xf32>
    %325 = vector.shape_cast %324 : vector<16xf32> to vector<16x1xf32>
    %cst_146 = arith.constant 3.200000e+01 : f32
    %326 = vector.broadcast %cst_146 : f32 to vector<16x1xf32>
    %327 = arith.divf %325, %326 : vector<16x1xf32>
    %328 = vector.broadcast %327 : vector<16x1xf32> to vector<16x32xf32>
    %329 = arith.subf %319, %328 : vector<16x32xf32>
    %330 = arith.mulf %329, %329 : vector<16x32xf32>
    %cst_147 = arith.constant dense<0.000000e+00> : vector<16xf32>
    %331 = vector.multi_reduction <add>, %330, %cst_147 [1] : vector<16x32xf32> to vector<16xf32>
    %332 = vector.shape_cast %331 : vector<16xf32> to vector<16x1xf32>
    %cst_148 = arith.constant 3.200000e+01 : f32
    %333 = vector.broadcast %cst_148 : f32 to vector<16x1xf32>
    %334 = arith.divf %332, %333 : vector<16x1xf32>
    %335 = vector.broadcast %327 : vector<16x1xf32> to vector<16x32xf32>
    %336 = arith.subf %319, %335 : vector<16x32xf32>
    %cst_149 = arith.constant 9.99999996E-13 : f32
    %337 = vector.broadcast %cst_149 : f32 to vector<16x1xf32>
    %338 = arith.addf %334, %337 : vector<16x1xf32>
    %339 = math.rsqrt %338 : vector<16x1xf32>
    %340 = vector.broadcast %339 : vector<16x1xf32> to vector<16x32xf32>
    %341 = arith.mulf %336, %340 : vector<16x32xf32>
    %342 = vector.broadcast %321 : vector<1x32xf32> to vector<16x32xf32>
    %343 = arith.mulf %341, %342 : vector<16x32xf32>
    %344 = vector.broadcast %323 : vector<1x32xf32> to vector<16x32xf32>
    %345 = arith.addf %343, %344 : vector<16x32xf32>
    %c0_150 = arith.constant 0 : index
    %c0_151 = arith.constant 0 : index
    %346 = vector.load %arg14[%c0_150, %c0_151] : memref<16x32xf32, #tpu.memory_space<vmem>>, vector<16x32xf32>
    tpu.vector_store %arg14[%c0_150, %c0_151], %345 {strides = array<i32>} : memref<16x32xf32, #tpu.memory_space<vmem>>, vector<16x32xf32>,
    return
  }
}

</mosaic_0001>

<bundles_post_ra>
// kernel: bert_encoder_pallas.1
= control target key start
LH: loop header
LB: loop body
LE: loop exit
PB: predicated region body
PF: predicated region fallthrough
CT: control target
= control target key end

     0   :  { %vm66_vm0 = vcmask 261120   ;;  %s3012_s0 = inlined_call_operand.vmem [shape: f32[16,32], index: 0, kind: input, shape index: {}]   ;;  %s3013_s1 = inlined_call_operand.vmem [shape: f32[2,1,8], index: 1, kind: input, shape index: {}]   ;;  %s3014_s2 = inlined_call_operand.vmem [shape: f32[2,32,96], index: 2, kind: input, shape index: {}]   ;;  %s3015_s3 = inlined_call_operand.vmem [shape: f32[2,1,96], index: 3, kind: input, shape index: {}]   ;;  %s3016_s4 = inlined_call_operand.vmem [shape: f32[2,32,32], index: 4, kind: input, shape index: {}]   ;;  %s3017_s5 = inlined_call_operand.vmem [shape: f32[2,1,32], index: 5, kind: input, shape index: {}]   ;;  %s3018_s6 = inlined_call_operand.vmem [shape: f32[2,1,32], index: 6, kind: input, shape index: {}]   ;;  %s3019_s7 = inlined_call_operand.vmem [shape: f32[2,1,32], index: 7, kind: input, shape index: {}]   ;;  %s3020_s8 = inlined_call_operand.vmem [shape: f32[2,32,64], index: 8, kind: input, shape index: {}]   ;;  %s3021_s9 = inlined_call_operand.vmem [shape: f32[2,1,64], index: 9, kind: input, shape index: {}]   ;;  %s3022_s10 = inlined_call_operand.vmem [shape: f32[2,64,32], index: 10, kind: input, shape index: {}]   ;;  %s3023_s11 = inlined_call_operand.vmem [shape: f32[2,1,32], index: 11, kind: input, shape index: {}]   ;;  %s3024_s12 = inlined_call_operand.vmem [shape: f32[2,1,32], index: 12, kind: input, shape index: {}]   ;;  %s3025_s13 = inlined_call_operand.vmem [shape: f32[2,1,32], index: 13, kind: input, shape index: {}]   ;;  %s3026_s14 = inlined_call_operand.hbm [shape: f32[16,32], index: 14, kind: output, shape index: {}]  }
   0x1   :  { %v61_v0 = vld [vmem:[%s3014_s2 + $0x18] sm:$0xff]  ;;  %v60_v1 = vld [vmem:[%s3014_s2 + $0x10] sm:$0xff]  ;;  %v59_v2 = vld [vmem:[%s3014_s2 + $0x8] sm:$0xff] }
   0x2   :  { %85 = vmatpush.msra.mxu0 %v61_v0  ;;  %v58_v3 = vld [vmem:[%s3014_s2] sm:$0xff] }
   0x3   :  { %v2387_v4 = vld [vmem:[%s3012_s0] sm:$0xff] }
   0x4   :  { %86 = vmatpush.msra.mxu0 %v60_v1 }
   0x6   :  { %87 = vmatpush.msra.mxu0 %v59_v2 }
   0x8   :  { %88 = vmatpush.msra.mxu0 %v58_v3 }
   0x9   :  { %2010 = vmatmul.msk.f32.vlgmr.msra.gmra.mxu0 %vm66_vm0, %v2387_v4 }
   0xa   :  { %19 = vsyncpa [#allocation3], 0  ;;  %v2394_v5 = vld [vmem:[%s3012_s0 + $0x8] sm:$0xff]  ;;  %v2144_v6 = vld [vmem:[%s3015_s3] ss:$0 sm:$0xff]  ;;  %s2280_s27 = smov 88  }
   0xb   :  { %s2281_s28 = smov 96   ;;  %s2282_s0 = smov 80   ;;  %vm99_vm1 = vcmask 64512   ;;  %v2145_v25 = vld [vmem:[%s3013_s1] ss:$0 sm:$0xff] }
   0xc   :  { %s2283_s29 = smov 120   ;;  %s2284_s30 = smov 72   ;;  %v2146_v31 = vld [vmem:[%s3013_s1 + $0x1] ss:$0 sm:$0xff] }
   0xd   :  { %s2285_s15 = smov 112   ;;  %s2286_s16 = smov 104  }
   0xe   :  { %s3036_s21 = smov 64   ;;  %s3028_s22 = smov 56  }
   0xf   :  { %s3027_s23 = smov 48   ;;  %s3033_s24 = smov 40  }
  0x10   :  { %s3031_s25 = smov 8   ;;  %s3029_s26 = smov 16  }
  0x11   :  { %2011 = vmatmul.msk.f32.gmra.mxu0 %vm66_vm0, %v2394_v5  ;;  %s3034_s17 = smov 24  }
  0x86   :  { %v90_v7 = vpop.f32.mrf.mxu0 }
  0x87   :  { %v2401_v8 = vadd.f32 %v2144_v6, %v90_v7 }
  0x89   :  { %257 = vrot.lane.b32.xlu2 %v2401_v8, %s2280_s27  ;;  %97 = vrot.lane.b32.xlu0 %v2401_v8, %s2281_s28 }
  0x8e   :  { %v93_v9 = vpop.f32.mrf.mxu0 }
  0x8f   :  { %v2407_v10 = vadd.f32 %v2144_v6, %v93_v9 }
  0x91   :  { %285 = vrot.lane.b32.xlu1 %v2407_v10, %s2280_s27  ;;  %417 = vrot.lane.b32.xlu2 %v2401_v8, %s2282_s0  ;;  %v2119_v59 = vpack.i.bf16 %v2407_v10, %v2401_v8 }
  0x92   :  { %125 = vrot.lane.b32.xlu0 %v2407_v10, %s2281_s28 }
  0x99   :  { %283 = vrot.lane.b32.xlu1 %v2407_v10, %s2283_s29  ;;  %577 = vrot.lane.b32.xlu2 %v2401_v8, %s2284_s30 }
  0x9a   :  { %255 = vrot.lane.b32.xlu0 %v2401_v8, %s2283_s29 }
  0xa1   :  { %415 = vrot.lane.b32.xlu1 %v2401_v8, %s2285_s15  ;;  %443 = vrot.lane.b32.xlu2 %v2407_v10, %s2285_s15 }
  0xa2   :  { %575 = vrot.lane.b32.xlu0 %v2401_v8, %s2286_s16 }
  0xa9   :  { %445 = vrot.lane.b32.xlu1 %v2407_v10, %s2282_s0 }
  0xaa   :  { %605 = vrot.lane.b32.xlu0 %v2407_v10, %s2284_s30 }
  0xb1   :  { %603 = vrot.lane.b32.xlu1 %v2407_v10, %s2286_s16 }
  0xe3   :  { %v258_v11 = vpop.permute.xlu2 %257 }
  0xe4   :  { %2018 = vmatpush.xpose.msk.msra.mxu1 %vm99_vm1, %v258_v11 }
  0xeb   :  { %v418_v15 = vpop.permute.xlu2 %417 }
  0xf3   :  { %v578_v18 = vpop.permute.xlu2 %577 }
  0xfb   :  { %v98_v12 = vpop.permute.xlu0 %97  ;;  %v444_v23 = vpop.permute.xlu2 %443 }
  0xfc   :  { %2012 = vmatpush.xpose.msk.msra.mxu2 %vm99_vm1, %v98_v12 }
  0xff   :  { %2013 = vmatmul.msk.f32.vlgmr.msra.gmra.mxu2 %vm99_vm1, %v2401_v8 }
 0x103   :  { %v286_v13 = vpop.permute.xlu1 %285 }
 0x104   :  { %v126_v14 = vpop.permute.xlu0 %125 }
 0x105   :  { %2014 = vmatpush.xpose.msk.msrb.mxu2 %vm99_vm1, %v126_v14 }
 0x108   :  { %2015 = vmatmul.msk.f32.vlgmr.msrb.gmra.mxu2 %vm99_vm1, %v2407_v10 }
 0x109   :  { %2020 = vmatpush.xpose.msk.msra.mxu2 %vm99_vm1, %v286_v13 }
 0x10b   :  { %v284_v16 = vpop.permute.xlu1 %283 }
 0x10c   :  { %v256_v17 = vpop.permute.xlu0 %255 }
 0x10d   :  { %2024 = vmatpush.xpose.msk.msrb.mxu2 %vm99_vm1, %v418_v15  ;;  %2019 = vmatmul.msk.f32.vlgmr.msra.gmra.mxu1 %vm99_vm1, %v256_v17 }
 0x110   :  { %2021 = vmatmul.msk.f32.vlgmr.msra.gmra.mxu2 %vm99_vm1, %v284_v16 }
 0x111   :  { %2030 = vmatpush.xpose.msk.msra.mxu2 %vm99_vm1, %v578_v18 }
 0x113   :  { %v416_v19 = vpop.permute.xlu1 %415 }
 0x114   :  { %v576_v20 = vpop.permute.xlu0 %575 }
 0x118   :  { %2025 = vmatmul.msk.f32.vlgmr.msrb.gmra.mxu2 %vm99_vm1, %v416_v19 }
 0x11b   :  { %v446_v21 = vpop.permute.xlu1 %445 }
 0x11c   :  { %v606_v22 = vpop.permute.xlu0 %605  ;;  %2026 = vmatpush.xpose.msk.msrb.mxu0 %vm99_vm1, %v446_v21 }
 0x11f   :  { %2027 = vmatmul.msk.f32.vlgmr.msrb.gmra.mxu0 %vm99_vm1, %v444_v23 }
 0x120   :  { %2032 = vmatpush.xpose.msk.msra.mxu0 %vm99_vm1, %v606_v22  ;;  %2031 = vmatmul.msk.f32.vlgmr.msra.gmra.mxu2 %vm99_vm1, %v576_v20 }
 0x123   :  { %v604_v24 = vpop.permute.xlu1 %603 }
 0x127   :  { %2033 = vmatmul.msk.f32.vlgmr.msra.gmra.mxu0 %vm99_vm1, %v604_v24 }
 0x182   :  { %v121_v26 = vpop.f32.mrf.mxu2 }
 0x183   :  { %v151_v27 = vmul.f32 0.35355338, %v121_v26 }
 0x185   :  { %v153_v28 = vadd.f32 %v2145_v25, %v151_v27 }
 0x187   :  { %v155_v29 = vsel %vm99_vm1, %v153_v28, -inf }
 0x188   :  { %156 = vmax.xlane.f32.xlu2 %v155_v29 }
 0x18a   :  { %v280_v30 = vpop.f32.mrf.mxu1 }
 0x18b   :  { %v311_v32 = vmul.f32 0.35355338, %v280_v30  ;;  %v148_v33 = vpop.f32.mrf.mxu2 }
 0x18c   :  { %v152_v34 = vmul.f32 0.35355338, %v148_v33 }
 0x18d   :  { %v313_v35 = vadd.f32 %v2145_v25, %v311_v32 }
 0x18e   :  { %v154_v36 = vadd.f32 %v2146_v31, %v152_v34 }
 0x18f   :  { %v315_v37 = vsel %vm99_vm1, %v313_v35, -inf }
 0x190   :  { %316 = vmax.xlane.f32.xlu1 %v315_v37  ;;  %v158_v38 = vsel %vm99_vm1, %v154_v36, -inf }
 0x191   :  { %159 = vmax.xlane.f32.xlu0 %v158_v38 }
 0x193   :  { %v308_v39 = vpop.f32.mrf.mxu2 }
 0x194   :  { %v312_v52 = vmul.f32 0.35355338, %v308_v39 }
 0x196   :  { %v314_v54 = vadd.f32 %v2146_v31, %v312_v52 }
 0x198   :  { %v318_v56 = vsel %vm99_vm1, %v314_v54, -inf }
 0x19b   :  { %v440_v40 = vpop.f32.mrf.mxu2 }
 0x19c   :  { %v468_v41 = vpop.f32.mrf.mxu0  ;;  %v471_v55 = vmul.f32 0.35355338, %v440_v40 }
 0x19d   :  { %v472_v42 = vmul.f32 0.35355338, %v468_v41 }
 0x19e   :  { %v473_v57 = vadd.f32 %v2145_v25, %v471_v55 }
 0x19f   :  { %v474_v43 = vadd.f32 %v2146_v31, %v472_v42 }
 0x1a0   :  { %v475_v58 = vsel %vm99_vm1, %v473_v57, -inf }
 0x1a1   :  { %v478_v44 = vsel %vm99_vm1, %v474_v43, -inf }
 0x1a2   :  { %479 = vmax.xlane.f32.xlu1 %v478_v44 }
 0x1a3   :  { %v600_v45 = vpop.f32.mrf.mxu2 }
 0x1a4   :  { %v631_v46 = vmul.f32 0.35355338, %v600_v45  ;;  %v628_v47 = vpop.f32.mrf.mxu0 }
 0x1a5   :  { %v632_v48 = vmul.f32 0.35355338, %v628_v47 }
 0x1a6   :  { %v2461_v49 = vadd.f32 %v2145_v25, %v631_v46 }
 0x1a7   :  { %v634_v50 = vadd.f32 %v2146_v31, %v632_v48 }
 0x1a8   :  { %v635_v51 = vsel %vm99_vm1, %v2461_v49, -inf }
 0x1a9   :  { %636 = vmax.xlane.f32.xlu0 %v635_v51  ;;  %v638_v53 = vsel %vm99_vm1, %v634_v50, -inf }
 0x1aa   :  { %639 = vmax.xlane.f32.xlu2 %v638_v53 }
 0x1b2   :  { %319 = vmax.xlane.f32.xlu2 %v318_v56 }
 0x1ba   :  { %476 = vmax.xlane.f32.xlu2 %v475_v58 }
 0x1bd   :  { %2120 = vrot.lane.b32.xlu0 %v2119_v59, %s3036_s21 }
 0x1d2   :  { %363 = vrot.lane.b32.xlu2 %v2401_v8, %s3028_s22 }
 0x1fb   :  { %v157_v60 = vpop.xlane.xlu2 %156 }
 0x1fc   :  { %v161_v61 = vsub.f32 %v153_v28, %v157_v60 }
 0x1fe   :  { %v163_v62 = vmul.f32 1.442695, %v161_v61 }
 0x200   :  { %2162 = vpow2.f32 %v163_v62 }
 0x203   :  { %v317_v63 = vpop.xlane.xlu1 %316 }
 0x204   :  { %v321_v0 = vsub.f32 %v313_v35, %v317_v63  ;;  %v160_v9 = vpop.xlane.xlu0 %159 }
 0x205   :  { %v162_v13 = vsub.f32 %v154_v36, %v160_v9 }
 0x206   :  { %v2473_v1 = vpop.eup %2162  ;;  %v323_v2 = vmul.f32 1.442695, %v321_v0 }
 0x207   :  { %v167_v3 = vsel %vm99_vm1, %v2473_v1, 0.0  ;;  %v165_v15 = vmul.f32 1.442695, %v162_v13 }
 0x208   :  { %2164 = vpow2.f32 %v323_v2  ;;  %168 = vadd.xlane.f32.xlu0 %v167_v3 }
 0x20e   :  { %v2477_v6 = vpop.eup %2164 }
 0x20f   :  { %v327_v7 = vsel %vm99_vm1, %v2477_v6, 0.0 }
 0x210   :  { %328 = vadd.xlane.f32.xlu2 %v327_v7 }
 0x215   :  { %v480_v11 = vpop.xlane.xlu1 %479 }
 0x216   :  { %v482_v12 = vsub.f32 %v474_v43, %v480_v11 }
 0x218   :  { %v485_v14 = vmul.f32 1.442695, %v482_v12 }
 0x21a   :  { %2166 = vpow2.f32 %v485_v14 }
 0x21b   :  { %2168 = vpow2.f32 %v165_v15 }
 0x21c   :  { %523 = vrot.lane.b32.xlu0 %v2401_v8, %s3027_s23  ;;  %v637_v24 = vpop.xlane.xlu0 %636 }
 0x21d   :  { %v640_v16 = vpop.xlane.xlu2 %639  ;;  %v641_v35 = vsub.f32 %v2461_v49, %v637_v24 }
 0x21e   :  { %v642_v18 = vsub.f32 %v634_v50, %v640_v16 }
 0x21f   :  { %v643_v38 = vmul.f32 1.442695, %v641_v35 }
 0x220   :  { %v2483_v17 = vpop.eup %2166  ;;  %v645_v20 = vmul.f32 1.442695, %v642_v18 }
 0x221   :  { %v490_v19 = vsel %vm99_vm1, %v2483_v17, 0.0  ;;  %v2489_v22 = vpop.eup %2168 }
 0x222   :  { %491 = vadd.xlane.f32.xlu1 %v490_v19  ;;  %2170 = vpow2.f32 %v645_v20  ;;  %v170_v26 = vsel %vm99_vm1, %v2489_v22, 0.0 }
 0x224   :  { %389 = vrot.lane.b32.xlu0 %v2407_v10, %s3028_s22 }
 0x225   :  { %v320_v21 = vpop.xlane.xlu2 %319 }
 0x226   :  { %v322_v23 = vsub.f32 %v314_v54, %v320_v21 }
 0x228   :  { %v325_v25 = vmul.f32 1.442695, %v322_v23  ;;  %v2495_v29 = vpop.eup %2170 }
 0x229   :  { %v650_v37 = vsel %vm99_vm1, %v2495_v29, 0.0 }
 0x22a   :  { %2172 = vpow2.f32 %v325_v25  ;;  %171 = vadd.xlane.f32.xlu1 %v170_v26 }
 0x22c   :  { %549 = vrot.lane.b32.xlu0 %v2407_v10, %s3027_s23  ;;  %s3050_s23 = smov 16  }
 0x22d   :  { %v477_v27 = vpop.xlane.xlu2 %476 }
 0x22e   :  { %v481_v28 = vsub.f32 %v473_v57, %v477_v27 }
 0x22f   :  { %v2121_v30 = vpop.permute.xlu0 %2120 }
 0x230   :  { %v2497_v31 = vpop.eup %2172  ;;  %v483_v32 = vmul.f32 1.442695, %v481_v28  ;;  %v2122_v33 = vunpack.i.l.bf16 %v2121_v30  ;;  %v2123_v34 = vunpack.i.h.bf16 %v2121_v30 }
 0x231   :  { %v330_v36 = vsel %vm99_vm1, %v2497_v31, 0.0 }
 0x232   :  { %2174 = vpow2.f32 %v483_v32  ;;  %224 = vmatpush.msra.mxu3 %v2122_v33  ;;  %331 = vadd.xlane.f32.xlu2 %v330_v36 }
 0x233   :  { %651 = vadd.xlane.f32.xlu1 %v650_v37  ;;  %2176 = vpow2.f32 %v643_v38 }
 0x234   :  { %250 = vmatpush.msrb.mxu3 %v2123_v34 }
 0x235   :  { %v364_v53 = vpop.permute.xlu2 %363 }
 0x238   :  { %v2504_v39 = vpop.eup %2174 }
 0x239   :  { %v487_v40 = vsel %vm99_vm1, %v2504_v39, 0.0  ;;  %v2508_v41 = vpop.eup %2176 }
 0x23a   :  { %v647_v42 = vsel %vm99_vm1, %v2508_v41, 0.0 }
 0x23b   :  { %488 = vadd.xlane.f32.xlu1 %v487_v40 }
 0x243   :  { %648 = vadd.xlane.f32.xlu1 %v647_v42 }
 0x24a   :  { %709 = vrot.lane.b32.xlu2 %v2407_v10, %s3033_s24 }
 0x25c   :  { %683 = vrot.lane.b32.xlu1 %v2401_v8, %s3033_s24  ;;  %s3051_s24 = smov 24  }
 0x27b   :  { %v169_v43 = vpop.xlane.xlu0 %168 }
 0x27c   :  { %2178 = vrcp.f32 %v169_v43  ;;  %v184_v47 = vand.u32 2147483648, %v169_v43  ;;  %v182_v49 = vand.u32 2147483647, %v169_v43  ;;  %vm178_vm3 = vweird.f32 %v169_v43 }
 0x27e   :  { %v185_v51 = vor.u32 1.1754944e-38, %v184_v47  ;;  %vm183_vm5 = vcmp.eq.f32.partialorder %v182_v49, 8.507059e+37 }
 0x282   :  { %v2179_v44 = vpop.eup %2178 }
 0x283   :  { %v174_v45 = vmul.f32 %v2179_v44, %v169_v43  ;;  %vm179_vm2 = vweird.f32 %v2179_v44  ;;  %v329_v55 = vpop.xlane.xlu2 %328 }
 0x284   :  { %vm180_vm4 = vmor %vm178_vm3, %vm179_vm2  ;;  %2180 = vrcp.f32 %v329_v55  ;;  %vm338_vm11 = vweird.f32 %v329_v55  ;;  %v344_v24 = vand.u32 2147483648, %v329_v55  ;;  %v342_v30 = vand.u32 2147483647, %v329_v55 }
 0x285   :  { %v175_v46 = vsub.f32 1.0, %v174_v45 }
 0x286   :  { %v345_v40 = vor.u32 1.1754944e-38, %v344_v24  ;;  %vm343_vm14 = vcmp.eq.f32.partialorder %v342_v30, 8.507059e+37 }
 0x287   :  { %v176_v48 = vmul.f32 %v2179_v44, %v175_v46 }
 0x289   :  { %v177_v50 = vadd.f32 %v2179_v44, %v176_v48 }
 0x28a   :  { %v2181_v58 = vpop.eup %2180 }
 0x28b   :  { %v181_v52 = vsel %vm180_vm4, %v2179_v44, %v177_v50  ;;  %v334_v61 = vmul.f32 %v2181_v58, %v329_v55  ;;  %vm339_vm8 = vweird.f32 %v2181_v58 }
 0x28c   :  { %v186_v10 = vsel %vm183_vm5, %v185_v51, %v181_v52  ;;  %vm2532_vm12 = vmor %vm338_vm11, %vm339_vm8 }
 0x28d   :  { %v187_v54 = vmul.f32 %v2473_v1, %v186_v10  ;;  %v335_v63 = vsub.f32 1.0, %v334_v61 }
 0x28e   :  { %v524_v8 = vpop.permute.xlu0 %523 }
 0x28f   :  { %2016 = vmatmul.msk.f32.vlgmr.msra.gmra.mxu3 %vm99_vm1, %v187_v54  ;;  %v336_v9 = vmul.f32 %v2181_v58, %v335_v63 }
 0x290   :  { %384 = vmatpush.msra.mxu3 %v364_v53  ;;  %v2147_v53 = vld [vmem:[%s3017_s5] ss:$0 sm:$0xff] }
 0x291   :  { %v337_v18 = vadd.f32 %v2181_v58, %v336_v9 }
 0x293   :  { %v341_v33 = vsel %vm2532_vm12, %v2181_v58, %v337_v18 }
 0x294   :  { %v346_v44 = vsel %vm343_vm14, %v345_v40, %v341_v33  ;;  %v767_v40 = vld [vmem:[%s3016_s4] sm:$0xff] }
 0x295   :  { %v2518_v56 = vpop.xlane.xlu1 %491 }
 0x296   :  { %v390_v57 = vpop.permute.xlu0 %389  ;;  %vm513_vm5 = vweird.f32 %v2518_v56  ;;  %v519_v52 = vand.u32 2147483648, %v2518_v56  ;;  %v517_v10 = vand.u32 2147483647, %v2518_v56 }
 0x297   :  { %410 = vmatpush.msrb.mxu1 %v390_v57 }
 0x298   :  { %vm518_vm8 = vcmp.eq.f32.partialorder %v517_v10, 8.507059e+37 }
 0x29d   :  { %v172_v59 = vpop.xlane.xlu1 %171 }
 0x29e   :  { %2182 = vrcp.f32 %v172_v59  ;;  %v550_v60 = vpop.permute.xlu0 %549  ;;  %v199_v12 = vand.u32 2147483648, %v172_v59  ;;  %v197_v14 = vand.u32 2147483647, %v172_v59  ;;  %vm193_vm7 = vweird.f32 %v172_v59 }
 0x29f   :  { %2184 = vrcp.f32 %v2518_v56  ;;  %570 = vmatpush.msra.mxu1 %v550_v60 }
 0x2a0   :  { %v200_v19 = vor.u32 1.1754944e-38, %v199_v12  ;;  %vm198_vm10 = vcmp.eq.f32.partialorder %v197_v14, 8.507059e+37 }
 0x2a4   :  { %v2183_v62 = vpop.eup %2182 }
 0x2a5   :  { %v2521_v0 = vpop.eup %2184  ;;  %v189_v1 = vmul.f32 %v2183_v62, %v172_v59  ;;  %v332_v2 = vpop.xlane.xlu2 %331  ;;  %vm194_vm6 = vweird.f32 %v2183_v62 }
 0x2a6   :  { %2186 = vrcp.f32 %v332_v2  ;;  %v2523_v3 = vpop.xlane.xlu1 %651  ;;  %v509_v11 = vmul.f32 %v2521_v0, %v2518_v56  ;;  %vm195_vm9 = vmor %vm193_vm7, %vm194_vm6  ;;  %v359_v34 = vand.u32 2147483648, %v332_v2  ;;  %v357_v38 = vand.u32 2147483647, %v332_v2 }
 0x2a7   :  { %v190_v7 = vsub.f32 1.0, %v189_v1  ;;  %2188 = vrcp.f32 %v2523_v3  ;;  %vm353_vm15 = vweird.f32 %v332_v2  ;;  %vm514_vm3 = vweird.f32 %v2521_v0 }
 0x2a8   :  { %v510_v20 = vsub.f32 1.0, %v509_v11  ;;  %v360_v45 = vor.u32 1.1754944e-38, %v359_v34  ;;  %vm358_vm4 = vcmp.eq.f32.partialorder %v357_v38, 8.507059e+37  ;;  %vm2549_vm6 = vmor %vm513_vm5, %vm514_vm3  ;;  %v679_v9 = vand.u32 2147483648, %v2523_v3  ;;  %v768_v38 = vld [vmem:[%s3016_s4 + $0x8] sm:$0xff] }
 0x2a9   :  { %v191_v13 = vmul.f32 %v2183_v62, %v190_v7  ;;  %v677_v12 = vand.u32 2147483647, %v2523_v3 }
 0x2aa   :  { %v511_v36 = vmul.f32 %v2521_v0, %v510_v20 }
 0x2ab   :  { %v192_v15 = vadd.f32 %v2183_v62, %v191_v13 }
 0x2ac   :  { %v2187_v16 = vpop.eup %2186 }
 0x2ad   :  { %v349_v21 = vmul.f32 %v2187_v16, %v332_v2  ;;  %v196_v23 = vsel %vm195_vm9, %v2183_v62, %v192_v15  ;;  %v2530_v27 = vpop.eup %2188  ;;  %vm354_vm13 = vweird.f32 %v2187_v16  ;;  %v710_v60 = vpop.permute.xlu2 %709 }
 0x2ae   :  { %v2528_v25 = vpop.xlane.xlu1 %488  ;;  %v201_v26 = vsel %vm198_vm10, %v200_v19, %v196_v23  ;;  %v669_v42 = vmul.f32 %v2530_v27, %v2523_v3  ;;  %vm355_vm2 = vmor %vm353_vm15, %vm354_vm13  ;;  %vm674_vm10 = vweird.f32 %v2530_v27  ;;  %vm673_vm13 = vweird.f32 %v2523_v3 }
 0x2af   :  { %v350_v32 = vsub.f32 1.0, %v349_v21  ;;  %2190 = vrcp.f32 %v2528_v25  ;;  %v202_v35 = vmul.f32 %v2489_v22, %v201_v26  ;;  %v512_v22 = vadd.f32 %v2521_v0, %v511_v36  ;;  %vm675_vm14 = vmor %vm673_vm13, %vm674_vm10  ;;  %v770_v36 = vld [vmem:[%s3016_s4 + $0x18] sm:$0xff] }
 0x2b0   :  { %v670_v48 = vsub.f32 1.0, %v669_v42  ;;  %v504_v58 = vand.u32 2147483648, %v2528_v25  ;;  %v502_v62 = vand.u32 2147483647, %v2528_v25  ;;  %vm498_vm9 = vweird.f32 %v2528_v25  ;;  %793 = vmatpush.msrb.mxu2 %v770_v36  ;;  %v2149_v36 = vld [vmem:[%s3019_s7] ss:$0 sm:$0xff] }
 0x2b1   :  { %v351_v37 = vmul.f32 %v2187_v16, %v350_v32  ;;  %2017 = vmatmul.msk.f32.vlgmr.msrb.gmra.mxu3 %vm99_vm1, %v202_v35  ;;  %v516_v57 = vsel %vm2549_vm6, %v2521_v0, %v512_v22  ;;  %v680_v19 = vor.u32 1.1754944e-38, %v679_v9  ;;  %vm678_vm15 = vcmp.eq.f32.partialorder %v677_v12, 8.507059e+37 }
 0x2b2   :  { %544 = vmatpush.msrb.mxu3 %v524_v8  ;;  %v347_v8 = vmul.f32 %v2477_v6, %v346_v44  ;;  %v671_v59 = vmul.f32 %v2530_v27, %v670_v48  ;;  %v520_v6 = vor.u32 1.1754944e-38, %v519_v52  ;;  %v505_v0 = vor.u32 1.1754944e-38, %v504_v58 }
 0x2b3   :  { %v352_v43 = vadd.f32 %v2187_v16, %v351_v37  ;;  %vm503_vm12 = vcmp.eq.f32.partialorder %v502_v62, 8.507059e+37  ;;  %v769_v37 = vld [vmem:[%s3016_s4 + $0x10] sm:$0xff]  ;;  %vm761_vm6 = vcmask 130048  }
 0x2b4   :  { %v521_v63 = vsel %vm518_vm8, %v520_v6, %v516_v57  ;;  %v672_v1 = vadd.f32 %v2530_v27, %v671_v59  ;;  %794 = vmatpush.msrb.mxu2 %v769_v37 }
 0x2b5   :  { %v2191_v46 = vpop.eup %2190  ;;  %v356_v47 = vsel %vm355_vm2, %v2187_v16, %v352_v43  ;;  %v522_v15 = vmul.f32 %v2483_v17, %v521_v63 }
 0x2b6   :  { %v494_v49 = vmul.f32 %v2191_v46, %v2528_v25  ;;  %v649_v50 = vpop.xlane.xlu1 %648  ;;  %v361_v51 = vsel %vm358_vm4, %v360_v45, %v356_v47  ;;  %vm499_vm7 = vweird.f32 %v2191_v46  ;;  %v676_v16 = vsel %vm675_vm14, %v2530_v27, %v672_v1  ;;  %795 = vmatpush.msrb.mxu2 %v768_v38 }
 0x2b7   :  { %2192 = vrcp.f32 %v649_v50  ;;  %v362_v55 = vmul.f32 %v2497_v31, %v361_v51  ;;  %vm500_vm11 = vmor %vm498_vm9, %vm499_vm7  ;;  %v681_v21 = vsel %vm678_vm15, %v680_v19, %v676_v16  ;;  %v664_v23 = vand.u32 2147483648, %v649_v50  ;;  %v871_v16 = vld [vmem:[%s3020_s8 + $0x10] sm:$0xff]  ;;  %v869_v19 = vld [vmem:[%s3020_s8] sm:$0xff] }
 0x2b8   :  { %v495_v54 = vsub.f32 1.0, %v494_v49  ;;  %vm658_vm3 = vweird.f32 %v649_v50  ;;  %v662_v3 = vand.u32 2147483647, %v649_v50  ;;  %v682_v17 = vmul.f32 %v2495_v29, %v681_v21  ;;  %796 = vmatpush.msrb.mxu2 %v767_v40 }
 0x2b9   :  { %2022 = vmatmul.msk.f32.vlgmr.msra.gmra.mxu3 %vm99_vm1, %v347_v8  ;;  %2023 = vmatmul.msk.f32.vlgmr.msrb.gmra.mxu1 %vm99_vm1, %v362_v55  ;;  %v665_v24 = vor.u32 1.1754944e-38, %v664_v23  ;;  %vm764_vm7 = vcmask 195584   ;;  %vm936_vm15 = vcmask 523264  }
 0x2ba   :  { %v496_v61 = vmul.f32 %v2191_v46, %v495_v54  ;;  %730 = vmatpush.msrb.mxu1 %v710_v60  ;;  %vm663_vm5 = vcmp.eq.f32.partialorder %v662_v3, 8.507059e+37 }
 0x2bc   :  { %v497_v31 = vadd.f32 %v2191_v46, %v496_v61  ;;  %v2294_v61 = vmov 32.0  }
 0x2bd   :  { %v2193_v56 = vpop.eup %2192  ;;  %2194 = vrcp.f32 %v2294_v61 }
 0x2be   :  { %v501_v2 = vsel %vm500_vm11, %v2191_v46, %v497_v31  ;;  %v654_v7 = vmul.f32 %v2193_v56, %v649_v50  ;;  %vm659_vm2 = vweird.f32 %v2193_v56 }
 0x2bf   :  { %v506_v11 = vsel %vm503_vm12, %v505_v0, %v501_v2  ;;  %vm660_vm4 = vmor %vm658_vm3, %vm659_vm2 }
 0x2c0   :  { %v655_v13 = vsub.f32 1.0, %v654_v7  ;;  %v507_v14 = vmul.f32 %v2504_v39, %v506_v11 }
 0x2c1   :  { %2029 = vmatmul.msk.f32.vlgmr.msra.gmra.mxu1 %vm99_vm1, %v522_v15  ;;  %v872_v15 = vld [vmem:[%s3020_s8 + $0x18] sm:$0xff] }
 0x2c2   :  { %v656_v18 = vmul.f32 %v2193_v56, %v655_v13  ;;  %2028 = vmatmul.msk.f32.vlgmr.msrb.gmra.mxu3 %vm99_vm1, %v507_v14  ;;  %895 = vmatpush.msrb.mxu0 %v872_v15  ;;  %v2151_v15 = vld [vmem:[%s3023_s11] ss:$0 sm:$0xff] }
 0x2c3   :  { %v2195_v62 = vpop.eup %2194 }
 0x2c4   :  { %v657_v20 = vadd.f32 %v2193_v56, %v656_v18  ;;  %v815_v6 = vmul.f32 32.0, %v2195_v62  ;;  %vm819_vm8 = vweird.f32 %v2195_v62  ;;  %896 = vmatpush.msrb.mxu0 %v871_v16  ;;  %v870_v18 = vld [vmem:[%s3020_s8 + $0x8] sm:$0xff] }
 0x2c6   :  { %v661_v39 = vsel %vm660_vm4, %v2193_v56, %v657_v20  ;;  %v816_v31 = vsub.f32 1.0, %v815_v6  ;;  %897 = vmatpush.msrb.mxu0 %v870_v18 }
 0x2c7   :  { %v666_v25 = vsel %vm663_vm5, %v665_v24, %v661_v39 }
 0x2c8   :  { %v667_v27 = vmul.f32 %v2508_v41, %v666_v25  ;;  %v817_v56 = vmul.f32 %v2195_v62, %v816_v31  ;;  %898 = vmatpush.msrb.mxu0 %v869_v19 }
 0x2c9   :  { %2035 = vmatmul.msk.f32.vlgmr.msrb.gmra.mxu1 %vm99_vm1, %v682_v17 }
 0x2ca   :  { %v818_v63 = vadd.f32 %v2195_v62, %v817_v56 }
 0x2cc   :  { %v2612_v0 = vsel %vm819_vm8, %v2195_v62, %v818_v63 }
 0x2ce   :  { %v684_v26 = vpop.permute.xlu1 %683 }
 0x2cf   :  { %704 = vmatpush.msra.mxu3 %v684_v26 }
 0x2d0   :  { %2034 = vmatmul.msk.f32.vlgmr.msra.gmra.mxu3 %vm99_vm1, %v667_v27 }
 0x312   :  { %v226_v28 = vpop.f32.mrf.mxu3 }
 0x334   :  { %v252_v30 = vpop.f32.mrf.mxu3 }
 0x336   :  { %v412_v32 = vpop.f32.mrf.mxu1 }
 0x33c   :  { %v386_v33 = vpop.f32.mrf.mxu3 }
 0x33d   :  { %737 = vrot.lane.b32.xlu0 %v386_v33, %s3031_s25 }
 0x33e   :  { %v572_v34 = vpop.f32.mrf.mxu1 }
 0x33f   :  { %747 = vrot.lane.b32.xlu1 %v572_v34, %s3029_s26  ;;  %v2148_v34 = vld [vmem:[%s3018_s6] ss:$0 sm:$0xff] }
 0x345   :  { %v546_v29 = vpop.f32.mrf.mxu3 }
 0x346   :  { %745 = vrot.lane.b32.xlu2 %v546_v29, %s3029_s26  ;;  %v732_v35 = vpop.f32.mrf.mxu1 }
 0x34e   :  { %739 = vrot.lane.b32.xlu2 %v412_v32, %s3031_s25 }
 0x353   :  { %v706_v41 = vpop.f32.mrf.mxu3 }
 0x354   :  { %753 = vrot.lane.b32.xlu0 %v706_v41, %s3034_s17 }
 0x35c   :  { %755 = vrot.lane.b32.xlu0 %v732_v35, %s3034_s17 }
 0x3a0   :  { %v746_v43 = vpop.permute.xlu2 %745 }
 0x3a8   :  { %v740_v47 = vpop.permute.xlu2 %739 }
 0x3a9   :  { %v760_v49 = vsel %vm99_vm1, %v252_v30, %v740_v47  ;;  %v931_v47 = vld [vmem:[%s3022_s10 + $0x38] sm:$0xff] }
 0x3aa   :  { %951 = vmatpush.msrb.mxu3 %v931_v47 }
 0x3af   :  { %v738_v42 = vpop.permute.xlu0 %737 }
 0x3b0   :  { %v759_v44 = vsel %vm99_vm1, %v226_v28, %v738_v42 }
 0x3b1   :  { %v762_v45 = vsel %vm761_vm6, %v759_v44, %v746_v43  ;;  %v748_v48 = vpop.permute.xlu1 %747 }
 0x3b2   :  { %v763_v50 = vsel %vm761_vm6, %v760_v49, %v748_v48  ;;  %v930_v48 = vld [vmem:[%s3022_s10 + $0x30] sm:$0xff]  ;;  %v929_v49 = vld [vmem:[%s3022_s10 + $0x28] sm:$0xff] }
 0x3b3   :  { %952 = vmatpush.msrb.mxu3 %v930_v48 }
 0x3b5   :  { %953 = vmatpush.msrb.mxu3 %v929_v49 }
 0x3c6   :  { %v754_v46 = vpop.permute.xlu0 %753 }
 0x3c7   :  { %v765_v22 = vsel %vm764_vm7, %v762_v45, %v754_v46 }
 0x3c8   :  { %2036 = vmatmul.msk.f32.vlgmr.msrb.gmra.mxu2 %vm66_vm0, %v765_v22 }
 0x3ce   :  { %v756_v51 = vpop.permute.xlu0 %755 }
 0x3cf   :  { %v766_v52 = vsel %vm764_vm7, %v763_v50, %v756_v51  ;;  %v928_v50 = vld [vmem:[%s3022_s10 + $0x20] sm:$0xff]  ;;  %v927_v51 = vld [vmem:[%s3022_s10 + $0x18] sm:$0xff] }
 0x3d0   :  { %2037 = vmatmul.msk.f32.gmra.mxu2 %vm66_vm0, %v766_v52  ;;  %954 = vmatpush.msrb.mxu3 %v928_v50  ;;  %v926_v52 = vld [vmem:[%s3022_s10 + $0x10] sm:$0xff] }
 0x3d2   :  { %955 = vmatpush.msrb.mxu3 %v927_v51 }
 0x3d4   :  { %956 = vmatpush.msrb.mxu3 %v926_v52  ;;  %v2152_v52 = vld [vmem:[%s3024_s12] ss:$0 sm:$0xff] }
 0x44b   :  { %v798_v10 = vpop.f32.mrf.mxu2 }
 0x44c   :  { %v799_v54 = vadd.f32 %v2147_v53, %v798_v10  ;;  %v924_v10 = vld [vmem:[%s3022_s10] sm:$0xff] }
 0x44e   :  { %v804_v8 = vadd.f32 %v799_v54, %v2387_v4  ;;  %v2150_v54 = vld [vmem:[%s3021_s9] ss:$0 sm:$0xff] }
 0x450   :  { %v808_v55 = vsel %vm66_vm0, %v804_v8, 0.0 }
 0x451   :  { %809 = vadd.xlane.f32.xlu2 %v808_v55 }
 0x453   :  { %v801_v57 = vpop.f32.mrf.mxu2 }
 0x454   :  { %v802_v58 = vadd.f32 %v2147_v53, %v801_v57  ;;  %v925_v53 = vld [vmem:[%s3022_s10 + $0x8] sm:$0xff] }
 0x455   :  { %957 = vmatpush.msrb.mxu3 %v925_v53 }
 0x456   :  { %v805_v59 = vadd.f32 %v802_v58, %v2394_v5 }
 0x457   :  { %958 = vmatpush.msrb.mxu3 %v924_v10 }
 0x458   :  { %v811_v60 = vsel %vm66_vm0, %v805_v59, 0.0 }
 0x459   :  { %812 = vadd.xlane.f32.xlu1 %v811_v60 }
 0x4c4   :  { %v810_v4 = vpop.xlane.xlu2 %809 }
 0x4c5   :  { %v821_v1 = vmul.f32 %v2612_v0, %v810_v4 }
 0x4c7   :  { %v823_v2 = vsub.f32 %v804_v8, %v821_v1 }
 0x4c9   :  { %v825_v7 = vmul.f32 %v823_v2, %v823_v2 }
 0x4cb   :  { %v827_v5 = vsel %vm66_vm0, %v825_v7, 0.0 }
 0x4cc   :  { %828 = vadd.xlane.f32.xlu0 %v827_v5  ;;  %v813_v9 = vpop.xlane.xlu1 %812 }
 0x4cd   :  { %v822_v11 = vmul.f32 %v2612_v0, %v813_v9 }
 0x4cf   :  { %v824_v12 = vsub.f32 %v805_v59, %v822_v11 }
 0x4d1   :  { %v826_v13 = vmul.f32 %v824_v12, %v824_v12 }
 0x4d3   :  { %v830_v14 = vsel %vm66_vm0, %v826_v13, 0.0 }
 0x4d4   :  { %831 = vadd.xlane.f32.xlu2 %v830_v14 }
 0x53f   :  { %v829_v20 = vpop.xlane.xlu0 %828 }
 0x540   :  { %v833_v21 = vmul.f32 %v829_v20, %v2612_v0 }
 0x542   :  { %v835_v23 = vadd.f32 1e-12, %v833_v21 }
 0x544   :  { %2196 = vrsqrt.f32 %v835_v23  ;;  %vm843_vm10 = vweird.f32 %v835_v23 }
 0x547   :  { %v832_v3 = vpop.xlane.xlu2 %831 }
 0x548   :  { %v834_v39 = vmul.f32 %v832_v3, %v2612_v0 }
 0x54a   :  { %v2197_v17 = vpop.eup %2196  ;;  %v836_v24 = vadd.f32 1e-12, %v834_v39 }
 0x54b   :  { %v838_v25 = vmul.f32 %v2197_v17, %v835_v23  ;;  %vm844_vm9 = vweird.f32 %v2197_v17 }
 0x54c   :  { %2198 = vrsqrt.f32 %v836_v24  ;;  %vm845_vm11 = vmor %vm843_vm10, %vm844_vm9  ;;  %vm853_vm13 = vweird.f32 %v836_v24 }
 0x54d   :  { %v839_v26 = vmul.f32 %v2197_v17, %v838_v25 }
 0x54f   :  { %v840_v27 = vmul.f32 0.5, %v839_v26 }
 0x551   :  { %v841_v28 = vsub.f32 1.5, %v840_v27 }
 0x552   :  { %v2199_v30 = vpop.eup %2198 }
 0x553   :  { %v842_v32 = vmul.f32 %v2197_v17, %v841_v28  ;;  %v848_v33 = vmul.f32 %v2199_v30, %v836_v24  ;;  %vm854_vm12 = vweird.f32 %v2199_v30 }
 0x554   :  { %vm855_vm14 = vmor %vm853_vm13, %vm854_vm12 }
 0x555   :  { %v846_v29 = vsel %vm845_vm11, %v2197_v17, %v842_v32  ;;  %v849_v41 = vmul.f32 %v2199_v30, %v848_v33 }
 0x556   :  { %v857_v35 = vmul.f32 %v846_v29, %v823_v2  ;;  %v2045_v29 = vld [vmem:[%s3014_s2 + $0x38] sm:$0xff] }
 0x557   :  { %v850_v37 = vmul.f32 0.5, %v849_v41  ;;  %1052 = vmatpush.msra.mxu1 %v2045_v29  ;;  %v2044_v41 = vld [vmem:[%s3014_s2 + $0x30] sm:$0xff] }
 0x558   :  { %v862_v38 = vmul.f32 %v2148_v34, %v857_v35  ;;  %v2043_v35 = vld [vmem:[%s3014_s2 + $0x28] sm:$0xff] }
 0x559   :  { %v851_v40 = vsub.f32 1.5, %v850_v37  ;;  %1053 = vmatpush.msra.mxu1 %v2044_v41 }
 0x55a   :  { %v867_v42 = vadd.f32 %v2149_v36, %v862_v38 }
 0x55b   :  { %v852_v43 = vmul.f32 %v2199_v30, %v851_v40  ;;  %1054 = vmatpush.msra.mxu1 %v2043_v35 }
 0x55c   :  { %2038 = vmatmul.msk.f32.vlgmr.msrb.gmra.mxu0 %vm66_vm0, %v867_v42 }
 0x55d   :  { %v856_v44 = vsel %vm855_vm14, %v2199_v30, %v852_v43 }
 0x55e   :  { %v858_v45 = vmul.f32 %v856_v44, %v824_v12 }
 0x560   :  { %v863_v46 = vmul.f32 %v2148_v34, %v858_v45 }
 0x562   :  { %v868_v22 = vadd.f32 %v2149_v36, %v863_v46  ;;  %v2042_v36 = vld [vmem:[%s3014_s2 + $0x20] sm:$0xff] }
 0x563   :  { %1055 = vmatpush.msra.mxu1 %v2042_v36 }
 0x564   :  { %2039 = vmatmul.msk.f32.gmra.mxu0 %vm66_vm0, %v868_v22 }
 0x5d9   :  { %v900_v8 = vpop.f32.mrf.mxu0 }
 0x5da   :  { %v901_v55 = vadd.f32 %v2150_v54, %v900_v8  ;;  %v2153_v8 = vld [vmem:[%s3025_s13] ss:$0 sm:$0xff] }
 0x5dc   :  { %v906_v57 = vmul.f32 %v901_v55, %v901_v55 }
 0x5de   :  { %v908_v58 = vmul.f32 %v906_v57, %v901_v55 }
 0x5e0   :  { %v910_v59 = vmul.f32 0.044715, %v908_v58 }
 0x5e1   :  { %v903_v60 = vpop.f32.mrf.mxu0 }
 0x5e2   :  { %v912_v61 = vadd.f32 %v910_v59, %v901_v55  ;;  %v904_v62 = vadd.f32 %v2150_v54, %v903_v60 }
 0x5e4   :  { %v914_v6 = vmul.f32 0.7978846, %v912_v61  ;;  %v907_v31 = vmul.f32 %v904_v62, %v904_v62 }
 0x5e6   :  { %2200 = vtanh.f32 %v914_v6  ;;  %v909_v56 = vmul.f32 %v907_v31, %v904_v62 }
 0x5e8   :  { %v911_v63 = vmul.f32 0.044715, %v909_v56  ;;  %v2154_v56 = vld [vmem:[%s3015_s3 + $0x1] ss:$0 sm:$0xff] }
 0x5ea   :  { %v913_v4 = vadd.f32 %v911_v63, %v904_v62 }
 0x5ec   :  { %v2201_v1 = vpop.eup %2200  ;;  %v915_v2 = vmul.f32 0.7978846, %v913_v4 }
 0x5ed   :  { %v918_v7 = vadd.f32 1.0, %v2201_v1 }
 0x5ee   :  { %2202 = vtanh.f32 %v915_v2 }
 0x5ef   :  { %v920_v5 = vmul.f32 0.5, %v918_v7 }
 0x5f1   :  { %v922_v9 = vmul.f32 %v920_v5, %v901_v55 }
 0x5f3   :  { %2040 = vmatmul.msk.f32.vlgmr.msrb.gmra.mxu3 %vm936_vm15, %v922_v9 }
 0x5f4   :  { %v2203_v11 = vpop.eup %2202 }
 0x5f5   :  { %v919_v12 = vadd.f32 1.0, %v2203_v11 }
 0x5f7   :  { %v921_v13 = vmul.f32 0.5, %v919_v12 }
 0x5f9   :  { %v923_v14 = vmul.f32 %v921_v13, %v904_v62 }
 0x5fb   :  { %2041 = vmatmul.msk.f32.gmra.mxu3 %vm936_vm15, %v923_v14 }
 0x676   :  { %v960_v16 = vpop.f32.mrf.mxu3 }
 0x677   :  { %v961_v18 = vadd.f32 %v2151_v15, %v960_v16 }
 0x679   :  { %v966_v19 = vadd.f32 %v961_v18, %v867_v42 }
 0x67b   :  { %v970_v20 = vsel %vm66_vm0, %v966_v19, 0.0 }
 0x67c   :  { %971 = vadd.xlane.f32.xlu1 %v970_v20 }
 0x67e   :  { %v963_v21 = vpop.f32.mrf.mxu3 }
 0x67f   :  { %v964_v23 = vadd.f32 %v2151_v15, %v963_v21 }
 0x681   :  { %v967_v3 = vadd.f32 %v964_v23, %v868_v22 }
 0x683   :  { %v973_v39 = vsel %vm66_vm0, %v967_v3, 0.0 }
 0x684   :  { %974 = vadd.xlane.f32.xlu0 %v973_v39 }
 0x6ef   :  { %v972_v17 = vpop.xlane.xlu1 %971 }
 0x6f0   :  { %v976_v24 = vmul.f32 %v972_v17, %v2612_v0  ;;  %v2252_v17 = vld [vmem:[%s3013_s1 + $0x1] ss:$0 sm:$0xff] }
 0x6f2   :  { %v978_v25 = vsub.f32 %v966_v19, %v976_v24 }
 0x6f4   :  { %v980_v26 = vmul.f32 %v978_v25, %v978_v25 }
 0x6f6   :  { %v982_v27 = vsel %vm66_vm0, %v980_v26, 0.0 }
 0x6f7   :  { %v975_v28 = vpop.xlane.xlu0 %974  ;;  %983 = vadd.xlane.f32.xlu2 %v982_v27 }
 0x6f8   :  { %v977_v30 = vmul.f32 %v975_v28, %v2612_v0 }
 0x6fa   :  { %v979_v32 = vsub.f32 %v967_v3, %v977_v30 }
 0x6fc   :  { %v981_v33 = vmul.f32 %v979_v32, %v979_v32 }
 0x6fe   :  { %v985_v34 = vsel %vm66_vm0, %v981_v33, 0.0 }
 0x6ff   :  { %986 = vadd.xlane.f32.xlu1 %v985_v34 }
 0x76a   :  { %v984_v37 = vpop.xlane.xlu2 %983 }
 0x76b   :  { %v988_v38 = vmul.f32 %v984_v37, %v2612_v0 }
 0x76d   :  { %v990_v40 = vadd.f32 1e-12, %v988_v38 }
 0x76f   :  { %2204 = vrsqrt.f32 %v990_v40  ;;  %vm998_vm3 = vweird.f32 %v990_v40 }
 0x772   :  { %v987_v42 = vpop.xlane.xlu1 %986 }
 0x773   :  { %v989_v43 = vmul.f32 %v987_v42, %v2612_v0 }
 0x775   :  { %v2205_v44 = vpop.eup %2204  ;;  %v991_v45 = vadd.f32 1e-12, %v989_v43 }
 0x776   :  { %v993_v46 = vmul.f32 %v2205_v44, %v990_v40  ;;  %vm999_vm2 = vweird.f32 %v2205_v44 }
 0x777   :  { %2206 = vrsqrt.f32 %v991_v45  ;;  %vm1000_vm4 = vmor %vm998_vm3, %vm999_vm2  ;;  %vm1008_vm8 = vweird.f32 %v991_v45 }
 0x778   :  { %v994_v22 = vmul.f32 %v2205_v44, %v993_v46 }
 0x77a   :  { %v995_v47 = vmul.f32 0.5, %v994_v22 }
 0x77c   :  { %v996_v48 = vsub.f32 1.5, %v995_v47 }
 0x77d   :  { %v2207_v49 = vpop.eup %2206 }
 0x77e   :  { %v997_v50 = vmul.f32 %v2205_v44, %v996_v48  ;;  %v1003_v51 = vmul.f32 %v2207_v49, %v991_v45  ;;  %vm1009_vm5 = vweird.f32 %v2207_v49 }
 0x77f   :  { %vm1010_vm9 = vmor %vm1008_vm8, %vm1009_vm5 }
 0x780   :  { %v1001_v53 = vsel %vm1000_vm4, %v2205_v44, %v997_v50  ;;  %v1004_v10 = vmul.f32 %v2207_v49, %v1003_v51 }
 0x781   :  { %v1012_v54 = vmul.f32 %v1001_v53, %v978_v25 }
 0x782   :  { %v1005_v55 = vmul.f32 0.5, %v1004_v10 }
 0x783   :  { %v1017_v57 = vmul.f32 %v2152_v52, %v1012_v54 }
 0x784   :  { %v1006_v58 = vsub.f32 1.5, %v1005_v55 }
 0x785   :  { %v2698_v59 = vadd.f32 %v2153_v8, %v1017_v57 }
 0x786   :  { %v1007_v60 = vmul.f32 %v2207_v49, %v1006_v58 }
 0x787   :  { %2047 = vmatmul.msk.f32.vlgmr.msra.gmra.mxu1 %vm66_vm0, %v2698_v59 }
 0x788   :  { %v1011_v61 = vsel %vm1010_vm9, %v2207_v49, %v1007_v60 }
 0x789   :  { %v1013_v62 = vmul.f32 %v1011_v61, %v979_v32  ;;  %v2253_v32 = vld [vmem:[%s3013_s1] ss:$0 sm:$0xff]  ;;  %s3041_s1 = smov 64  }
 0x78b   :  { %v1018_v6 = vmul.f32 %v2152_v52, %v1013_v62 }
 0x78d   :  { %v2702_v31 = vadd.f32 %v2153_v8, %v1018_v6 }
 0x78f   :  { %2048 = vmatmul.msk.f32.gmra.mxu1 %vm66_vm0, %v2702_v31 }
 0x804   :  { %v1057_v63 = vpop.f32.mrf.mxu1 }
 0x805   :  { %v2709_v4 = vadd.f32 %v2154_v56, %v1057_v63 }
 0x807   :  { %1064 = vrot.lane.b32.xlu0 %v2709_v4, %s2281_s28 }
 0x80c   :  { %v1060_v1 = vpop.f32.mrf.mxu1 }
 0x80d   :  { %v2713_v2 = vadd.f32 %v2154_v56, %v1060_v1 }
 0x80f   :  { %1221 = vrot.lane.b32.xlu0 %v2709_v4, %s2283_s29  ;;  %1251 = vrot.lane.b32.xlu1 %v2713_v2, %s2280_s27  ;;  %v2775_v8 = vpack.i.bf16 %v2713_v2, %v2709_v4 }
 0x810   :  { %1091 = vrot.lane.b32.xlu2 %v2713_v2, %s2281_s28 }
 0x817   :  { %1249 = vrot.lane.b32.xlu0 %v2713_v2, %s2283_s29  ;;  %1411 = vrot.lane.b32.xlu1 %v2713_v2, %s2282_s0  ;;  %s3042_s29 = smov 40  }
 0x818   :  { %1223 = vrot.lane.b32.xlu2 %v2709_v4, %s2280_s27 }
 0x81f   :  { %1383 = vrot.lane.b32.xlu0 %v2709_v4, %s2282_s0  ;;  %1381 = vrot.lane.b32.xlu1 %v2709_v4, %s2285_s15 }
 0x820   :  { %1409 = vrot.lane.b32.xlu2 %v2713_v2, %s2285_s15  ;;  %s3044_s15 = smov 48  }
 0x827   :  { %1569 = vrot.lane.b32.xlu0 %v2713_v2, %s2286_s16  ;;  %1543 = vrot.lane.b32.xlu1 %v2709_v4, %s2284_s30 }
 0x828   :  { %1571 = vrot.lane.b32.xlu2 %v2713_v2, %s2284_s30  ;;  %s3043_s30 = smov 56  }
 0x830   :  { %1541 = vrot.lane.b32.xlu2 %v2709_v4, %s2286_s16  ;;  %s3049_s16 = smov 8  }
 0x86a   :  { %v1092_v7 = vpop.permute.xlu2 %1091 }
 0x86b   :  { %2051 = vmatpush.xpose.msk.msra.mxu0 %vm99_vm1, %v1092_v7 }
 0x86e   :  { %2052 = vmatmul.msk.f32.vlgmr.msra.gmra.mxu0 %vm99_vm1, %v2713_v2 }
 0x872   :  { %v1224_v5 = vpop.permute.xlu2 %1223 }
 0x873   :  { %2055 = vmatpush.xpose.msk.msrb.mxu0 %vm99_vm1, %v1224_v5 }
 0x879   :  { %v1065_v9 = vpop.permute.xlu0 %1064 }
 0x87a   :  { %2049 = vmatpush.xpose.msk.msra.mxu2 %vm99_vm1, %v1065_v9  ;;  %v1410_v11 = vpop.permute.xlu2 %1409 }
 0x87d   :  { %2050 = vmatmul.msk.f32.vlgmr.msra.gmra.mxu2 %vm99_vm1, %v2709_v4 }
 0x881   :  { %v1222_v12 = vpop.permute.xlu0 %1221  ;;  %v1252_v13 = vpop.permute.xlu1 %1251 }
 0x882   :  { %2056 = vmatmul.msk.f32.vlgmr.msrb.gmra.mxu0 %vm99_vm1, %v1222_v12  ;;  %2057 = vmatpush.xpose.msk.msra.mxu3 %vm99_vm1, %v1252_v13  ;;  %v1572_v16 = vpop.permute.xlu2 %1571 }
 0x889   :  { %v1250_v14 = vpop.permute.xlu0 %1249  ;;  %v1412_v15 = vpop.permute.xlu1 %1411 }
 0x88a   :  { %2058 = vmatmul.msk.f32.vlgmr.msra.gmra.mxu3 %vm99_vm1, %v1250_v14  ;;  %v1542_v23 = vpop.permute.xlu2 %1541 }
 0x88b   :  { %2063 = vmatpush.xpose.msk.msrb.mxu3 %vm99_vm1, %v1412_v15 }
 0x88f   :  { %2069 = vmatpush.xpose.msk.msra.mxu3 %vm99_vm1, %v1572_v16 }
 0x891   :  { %v1384_v18 = vpop.permute.xlu0 %1383  ;;  %v1382_v19 = vpop.permute.xlu1 %1381 }
 0x892   :  { %2061 = vmatpush.xpose.msk.msra.mxu0 %vm99_vm1, %v1384_v18  ;;  %2064 = vmatmul.msk.f32.vlgmr.msrb.gmra.mxu3 %vm99_vm1, %v1410_v11 }
 0x895   :  { %2062 = vmatmul.msk.f32.vlgmr.msra.gmra.mxu0 %vm99_vm1, %v1382_v19 }
 0x899   :  { %v1570_v20 = vpop.permute.xlu0 %1569  ;;  %v1544_v21 = vpop.permute.xlu1 %1543 }
 0x89a   :  { %2067 = vmatpush.xpose.msk.msrb.mxu0 %vm99_vm1, %v1544_v21  ;;  %2070 = vmatmul.msk.f32.vlgmr.msra.gmra.mxu3 %vm99_vm1, %v1570_v20 }
 0x89d   :  { %2068 = vmatmul.msk.f32.vlgmr.msrb.gmra.mxu0 %vm99_vm1, %v1542_v23 }
 0x8eb   :  { %v1114_v3 = vpop.f32.mrf.mxu0 }
 0x8ec   :  { %v1118_v39 = vmul.f32 0.35355338, %v1114_v3 }
 0x8ee   :  { %v1120_v24 = vadd.f32 %v2252_v17, %v1118_v39 }
 0x8f0   :  { %v1124_v25 = vsel %vm99_vm1, %v1120_v24, -inf }
 0x8f1   :  { %1125 = vmax.xlane.f32.xlu1 %v1124_v25 }
 0x8ff   :  { %v1246_v26 = vpop.f32.mrf.mxu0 }
 0x900   :  { %v1277_v27 = vmul.f32 0.35355338, %v1246_v26  ;;  %v1087_v28 = vpop.f32.mrf.mxu2 }
 0x901   :  { %v1117_v30 = vmul.f32 0.35355338, %v1087_v28 }
 0x902   :  { %v1279_v33 = vadd.f32 %v2253_v32, %v1277_v27 }
 0x903   :  { %v1119_v34 = vadd.f32 %v2253_v32, %v1117_v30 }
 0x904   :  { %v1281_v29 = vsel %vm99_vm1, %v1279_v33, -inf }
 0x905   :  { %1282 = vmax.xlane.f32.xlu2 %v1281_v29  ;;  %v1121_v41 = vsel %vm99_vm1, %v1119_v34, -inf }
 0x906   :  { %1122 = vmax.xlane.f32.xlu0 %v1121_v41 }
 0x90d   :  { %v1274_v35 = vpop.f32.mrf.mxu3 }
 0x90e   :  { %v1278_v36 = vmul.f32 0.35355338, %v1274_v35 }
 0x910   :  { %v1280_v37 = vadd.f32 %v2252_v17, %v1278_v36 }
 0x912   :  { %v1406_v38 = vpop.f32.mrf.mxu0  ;;  %v1284_v40 = vsel %vm99_vm1, %v1280_v37, -inf }
 0x913   :  { %v1437_v42 = vmul.f32 0.35355338, %v1406_v38  ;;  %1285 = vmax.xlane.f32.xlu0 %v1284_v40 }
 0x915   :  { %v1434_v43 = vpop.f32.mrf.mxu3  ;;  %v1439_v44 = vadd.f32 %v2253_v32, %v1437_v42 }
 0x916   :  { %v1438_v45 = vmul.f32 0.35355338, %v1434_v43 }
 0x917   :  { %v1441_v46 = vsel %vm99_vm1, %v1439_v44, -inf }
 0x918   :  { %1442 = vmax.xlane.f32.xlu1 %v1441_v46  ;;  %v1440_v22 = vadd.f32 %v2252_v17, %v1438_v45 }
 0x91a   :  { %v1566_v47 = vpop.f32.mrf.mxu0  ;;  %v1444_v48 = vsel %vm99_vm1, %v1440_v22, -inf }
 0x91b   :  { %v1597_v49 = vmul.f32 0.35355338, %v1566_v47  ;;  %1445 = vmax.xlane.f32.xlu2 %v1444_v48 }
 0x91d   :  { %v1594_v50 = vpop.f32.mrf.mxu3  ;;  %v1599_v51 = vadd.f32 %v2253_v32, %v1597_v49 }
 0x91e   :  { %v1598_v52 = vmul.f32 0.35355338, %v1594_v50 }
 0x91f   :  { %v1601_v53 = vsel %vm99_vm1, %v1599_v51, -inf }
 0x920   :  { %1602 = vmax.xlane.f32.xlu0 %v1601_v53  ;;  %v1600_v10 = vadd.f32 %v2252_v17, %v1598_v52 }
 0x922   :  { %v1604_v54 = vsel %vm99_vm1, %v1600_v10, -inf }
 0x923   :  { %1605 = vmax.xlane.f32.xlu1 %v1604_v54 }
 0x933   :  { %2125 = vrot.lane.b32.xlu2 %v2775_v8, %s3041_s1 }
 0x964   :  { %v1126_v55 = vpop.xlane.xlu1 %1125 }
 0x965   :  { %v1128_v57 = vsub.f32 %v1120_v24, %v1126_v55 }
 0x967   :  { %v1131_v58 = vmul.f32 1.442695, %v1128_v57 }
 0x969   :  { %2208 = vpow2.f32 %v1131_v58 }
 0x96f   :  { %v2779_v60 = vpop.eup %2208 }
 0x970   :  { %v1136_v61 = vsel %vm99_vm1, %v2779_v60, 0.0 }
 0x971   :  { %1137 = vadd.xlane.f32.xlu0 %v1136_v61 }
 0x978   :  { %v1283_v62 = vpop.xlane.xlu2 %1282 }
 0x979   :  { %v1287_v6 = vsub.f32 %v1279_v33, %v1283_v62  ;;  %v1123_v56 = vpop.xlane.xlu0 %1122 }
 0x97a   :  { %v1127_v63 = vsub.f32 %v1119_v34, %v1123_v56 }
 0x97b   :  { %v1289_v1 = vmul.f32 1.442695, %v1287_v6 }
 0x97c   :  { %v1129_v4 = vmul.f32 1.442695, %v1127_v63 }
 0x97d   :  { %2210 = vpow2.f32 %v1289_v1 }
 0x97e   :  { %2212 = vpow2.f32 %v1129_v4 }
 0x983   :  { %v2783_v2 = vpop.eup %2210 }
 0x984   :  { %v2785_v7 = vpop.eup %2212  ;;  %v1293_v5 = vsel %vm99_vm1, %v2783_v2, 0.0 }
 0x985   :  { %1294 = vadd.xlane.f32.xlu1 %v1293_v5  ;;  %v1133_v9 = vsel %vm99_vm1, %v2785_v7, 0.0 }
 0x986   :  { %v1286_v11 = vpop.xlane.xlu0 %1285  ;;  %1134 = vadd.xlane.f32.xlu2 %v1133_v9 }
 0x987   :  { %v1288_v12 = vsub.f32 %v1280_v37, %v1286_v11 }
 0x989   :  { %v1291_v13 = vmul.f32 1.442695, %v1288_v12 }
 0x98b   :  { %2214 = vpow2.f32 %v1291_v13  ;;  %v1443_v14 = vpop.xlane.xlu1 %1442 }
 0x98c   :  { %v1447_v15 = vsub.f32 %v1439_v44, %v1443_v14 }
 0x98e   :  { %v1449_v16 = vmul.f32 1.442695, %v1447_v15  ;;  %v1446_v18 = vpop.xlane.xlu2 %1445 }
 0x98f   :  { %v1448_v19 = vsub.f32 %v1440_v22, %v1446_v18 }
 0x990   :  { %2216 = vpow2.f32 %v1449_v16 }
 0x991   :  { %v2791_v20 = vpop.eup %2214  ;;  %v1451_v21 = vmul.f32 1.442695, %v1448_v19 }
 0x992   :  { %v1296_v23 = vsel %vm99_vm1, %v2791_v20, 0.0 }
 0x993   :  { %2218 = vpow2.f32 %v1451_v21  ;;  %1297 = vadd.xlane.f32.xlu2 %v1296_v23  ;;  %v1603_v3 = vpop.xlane.xlu0 %1602 }
 0x994   :  { %v1607_v39 = vsub.f32 %v1599_v51, %v1603_v3 }
 0x996   :  { %v2795_v17 = vpop.eup %2216  ;;  %v1609_v24 = vmul.f32 1.442695, %v1607_v39  ;;  %v1606_v25 = vpop.xlane.xlu1 %1605 }
 0x997   :  { %v2126_v26 = vpop.permute.xlu2 %2125  ;;  %v1608_v27 = vsub.f32 %v1600_v10, %v1606_v25  ;;  %v1453_v32 = vsel %vm99_vm1, %v2795_v17, 0.0 }
 0x998   :  { %v2128_v28 = vunpack.i.h.bf16 %v2126_v26  ;;  %v2127_v30 = vunpack.i.l.bf16 %v2126_v26  ;;  %2220 = vpow2.f32 %v1609_v24  ;;  %1454 = vadd.xlane.f32.xlu0 %v1453_v32 }
 0x999   :  { %v2799_v33 = vpop.eup %2218  ;;  %v1611_v34 = vmul.f32 1.442695, %v1608_v27 }
 0x99a   :  { %1190 = vmatpush.msrb.mxu1 %v2127_v30  ;;  %1216 = vmatpush.msrb.mxu2 %v2128_v28  ;;  %v1456_v29 = vsel %vm99_vm1, %v2799_v33, 0.0 }
 0x99b   :  { %2222 = vpow2.f32 %v1611_v34  ;;  %1457 = vadd.xlane.f32.xlu1 %v1456_v29 }
 0x99e   :  { %v2803_v41 = vpop.eup %2220 }
 0x99f   :  { %v1613_v35 = vsel %vm99_vm1, %v2803_v41, 0.0 }
 0x9a0   :  { %1614 = vadd.xlane.f32.xlu0 %v1613_v35 }
 0x9a1   :  { %v2807_v36 = vpop.eup %2222 }
 0x9a2   :  { %v1616_v37 = vsel %vm99_vm1, %v2807_v36, 0.0 }
 0x9a3   :  { %1617 = vadd.xlane.f32.xlu1 %v1616_v37 }
 0x9ab   :  { %2140 = vrot.lane.b32.xlu2 %v2775_v8, %s3042_s29 }
 0x9b4   :  { %2130 = vrot.lane.b32.xlu0 %v2775_v8, %s3043_s30 }
 0x9bc   :  { %2135 = vrot.lane.b32.xlu1 %v2775_v8, %s3044_s15 }
 0x9e4   :  { %v1138_v38 = vpop.xlane.xlu0 %1137 }
 0x9e5   :  { %2224 = vrcp.f32 %v1138_v38  ;;  %v1165_v44 = vand.u32 2147483648, %v1138_v38  ;;  %v1163_v46 = vand.u32 2147483647, %v1138_v38  ;;  %vm1159_vm11 = vweird.f32 %v1138_v38 }
 0x9e7   :  { %v1166_v47 = vor.u32 1.1754944e-38, %v1165_v44  ;;  %vm1164_vm13 = vcmp.eq.f32.partialorder %v1163_v46, 8.507059e+37 }
 0x9eb   :  { %v2225_v40 = vpop.eup %2224 }
 0x9ec   :  { %v1155_v42 = vmul.f32 %v2225_v40, %v1138_v38  ;;  %vm1160_vm10 = vweird.f32 %v2225_v40 }
 0x9ed   :  { %vm1161_vm12 = vmor %vm1159_vm11, %vm1160_vm10 }
 0x9ee   :  { %v1156_v43 = vsub.f32 1.0, %v1155_v42 }
 0x9f0   :  { %v1157_v45 = vmul.f32 %v2225_v40, %v1156_v43 }
 0x9f2   :  { %v1158_v22 = vadd.f32 %v2225_v40, %v1157_v45 }
 0x9f4   :  { %v1162_v48 = vsel %vm1161_vm12, %v2225_v40, %v1158_v22 }
 0x9f5   :  { %v1167_v49 = vsel %vm1164_vm13, %v1166_v47, %v1162_v48 }
 0x9f6   :  { %v1168_v50 = vmul.f32 %v2779_v60, %v1167_v49 }
 0x9f8   :  { %2054 = vmatmul.msk.f32.vlgmr.msrb.gmra.mxu2 %vm99_vm1, %v1168_v50  ;;  %v1295_v10 = vpop.xlane.xlu1 %1294 }
 0x9f9   :  { %v1135_v51 = vpop.xlane.xlu2 %1134  ;;  %v1310_v39 = vand.u32 2147483648, %v1295_v10  ;;  %vm1304_vm8 = vweird.f32 %v1295_v10  ;;  %v1308_v24 = vand.u32 2147483647, %v1295_v10 }
 0x9fa   :  { %2226 = vrcp.f32 %v1135_v51  ;;  %v1150_v8 = vand.u32 2147483648, %v1135_v51  ;;  %v1148_v57 = vand.u32 2147483647, %v1135_v51  ;;  %vm1144_vm2 = vweird.f32 %v1135_v51 }
 0x9fb   :  { %2228 = vrcp.f32 %v1295_v10  ;;  %v1311_v34 = vor.u32 1.1754944e-38, %v1310_v39  ;;  %vm1309_vm11 = vcmp.eq.f32.partialorder %v1308_v24, 8.507059e+37 }
 0x9fc   :  { %v1151_v62 = vor.u32 1.1754944e-38, %v1150_v8  ;;  %vm1149_vm4 = vcmp.eq.f32.partialorder %v1148_v57, 8.507059e+37 }
 0xa00   :  { %v2227_v52 = vpop.eup %2226 }
 0xa01   :  { %v1140_v53 = vmul.f32 %v2227_v52, %v1135_v51  ;;  %vm1145_vm14 = vweird.f32 %v2227_v52  ;;  %v2229_v56 = vpop.eup %2228 }
 0xa02   :  { %vm1146_vm3 = vmor %vm1144_vm2, %vm1145_vm14  ;;  %v1300_v4 = vmul.f32 %v2229_v56, %v1295_v10  ;;  %vm1305_vm5 = vweird.f32 %v2229_v56 }
 0xa03   :  { %v1141_v54 = vsub.f32 1.0, %v1140_v53  ;;  %vm1306_vm9 = vmor %vm1304_vm8, %vm1305_vm5 }
 0xa04   :  { %v1301_v11 = vsub.f32 1.0, %v1300_v4 }
 0xa05   :  { %v1142_v55 = vmul.f32 %v2227_v52, %v1141_v54 }
 0xa06   :  { %v1298_v58 = vpop.xlane.xlu2 %1297  ;;  %v1302_v15 = vmul.f32 %v2229_v56, %v1301_v11 }
 0xa07   :  { %v1143_v61 = vadd.f32 %v2227_v52, %v1142_v55  ;;  %2230 = vrcp.f32 %v1298_v58  ;;  %v1325_v29 = vand.u32 2147483648, %v1298_v58  ;;  %vm1319_vm12 = vweird.f32 %v1298_v58 }
 0xa08   :  { %v1303_v21 = vadd.f32 %v2229_v56, %v1302_v15  ;;  %v1323_v35 = vand.u32 2147483647, %v1298_v58 }
 0xa09   :  { %v1147_v6 = vsel %vm1146_vm3, %v2227_v52, %v1143_v61  ;;  %v1326_v45 = vor.u32 1.1754944e-38, %v1325_v29 }
 0xa0a   :  { %v1152_v60 = vsel %vm1149_vm4, %v1151_v62, %v1147_v6  ;;  %v1307_v27 = vsel %vm1306_vm9, %v2229_v56, %v1303_v21  ;;  %vm1324_vm14 = vcmp.eq.f32.partialorder %v1323_v35, 8.507059e+37 }
 0xa0b   :  { %v2819_v63 = vpop.xlane.xlu0 %1454  ;;  %v1153_v1 = vmul.f32 %v2785_v7, %v1152_v60  ;;  %v1312_v37 = vsel %vm1309_vm11, %v1311_v34, %v1307_v27 }
 0xa0c   :  { %2232 = vrcp.f32 %v2819_v63  ;;  %v1313_v46 = vmul.f32 %v2783_v2, %v1312_v37  ;;  %vm1464_vm2 = vweird.f32 %v2819_v63  ;;  %v1470_v52 = vand.u32 2147483648, %v2819_v63 }
 0xa0d   :  { %2053 = vmatmul.msk.f32.vlgmr.msrb.gmra.mxu1 %vm99_vm1, %v1153_v1  ;;  %v2231_v9 = vpop.eup %2230  ;;  %v1468_v8 = vand.u32 2147483647, %v2819_v63 }
 0xa0e   :  { %v2823_v5 = vpop.xlane.xlu1 %1457  ;;  %v1315_v12 = vmul.f32 %v2231_v9, %v1298_v58  ;;  %vm1320_vm10 = vweird.f32 %v2231_v9  ;;  %v1471_v60 = vor.u32 1.1754944e-38, %v1470_v52  ;;  %v2141_v1 = vpop.permute.xlu2 %2140 }
 0xa0f   :  { %2234 = vrcp.f32 %v2823_v5  ;;  %vm1321_vm13 = vmor %vm1319_vm12, %vm1320_vm10  ;;  %v1485_v53 = vand.u32 2147483648, %v2823_v5  ;;  %vm1479_vm8 = vweird.f32 %v2823_v5  ;;  %v1483_v55 = vand.u32 2147483647, %v2823_v5 }
 0xa10   :  { %v1316_v16 = vsub.f32 1.0, %v1315_v12  ;;  %vm1469_vm10 = vcmp.eq.f32.partialorder %v1468_v8, 8.507059e+37  ;;  %v2142_v39 = vunpack.i.l.bf16 %v2141_v1 }
 0xa11   :  { %v1486_v56 = vor.u32 1.1754944e-38, %v1485_v53  ;;  %vm1484_vm11 = vcmp.eq.f32.partialorder %v1483_v55, 8.507059e+37 }
 0xa12   :  { %v2829_v14 = vpop.eup %2232  ;;  %v1317_v23 = vmul.f32 %v2231_v9, %v1316_v16 }
 0xa13   :  { %v2827_v13 = vpop.xlane.xlu0 %1614  ;;  %v1460_v19 = vmul.f32 %v2829_v14, %v2819_v63  ;;  %vm1465_vm3 = vweird.f32 %v2829_v14 }
 0xa14   :  { %2236 = vrcp.f32 %v2827_v13  ;;  %v1318_v28 = vadd.f32 %v2231_v9, %v1317_v23  ;;  %vm2859_vm5 = vmor %vm1464_vm2, %vm1465_vm3  ;;  %vm1624_vm12 = vweird.f32 %v2827_v13  ;;  %v1630_v12 = vand.u32 2147483648, %v2827_v13 }
 0xa15   :  { %v2833_v7 = vpop.eup %2234  ;;  %v1461_v25 = vsub.f32 1.0, %v1460_v19 }
 0xa16   :  { %v2831_v18 = vpop.xlane.xlu1 %1617  ;;  %v1475_v3 = vmul.f32 %v2833_v7, %v2823_v5  ;;  %v1322_v40 = vsel %vm1321_vm13, %v2231_v9, %v1318_v28  ;;  %vm1480_vm4 = vweird.f32 %v2833_v7  ;;  %v1628_v5 = vand.u32 2147483647, %v2827_v13 }
 0xa17   :  { %2238 = vrcp.f32 %v2831_v18  ;;  %v1462_v38 = vmul.f32 %v2829_v14, %v1461_v25  ;;  %v1327_v22 = vsel %vm1324_vm14, %v1326_v45, %v1322_v40  ;;  %vm1481_vm9 = vmor %vm1479_vm8, %vm1480_vm4  ;;  %vm1639_vm3 = vweird.f32 %v2831_v18  ;;  %v2074_v40 = vld [vmem:[%s3016_s4 + $0x28] sm:$0xff] }
 0xa18   :  { %v1476_v30 = vsub.f32 1.0, %v1475_v3  ;;  %v1328_v57 = vmul.f32 %v2791_v20, %v1327_v22  ;;  %v1643_v19 = vand.u32 2147483647, %v2831_v18  ;;  %v2143_v3 = vunpack.i.h.bf16 %v2141_v1 }
 0xa19   :  { %v1463_v47 = vadd.f32 %v2829_v14, %v1462_v38  ;;  %v2075_v38 = vld [vmem:[%s3016_s4 + $0x30] sm:$0xff] }
 0xa1a   :  { %v2841_v26 = vpop.eup %2236  ;;  %v1477_v42 = vmul.f32 %v2833_v7, %v1476_v30  ;;  %vm1644_vm8 = vcmp.eq.f32.partialorder %v1643_v19, 8.507059e+37 }
 0xa1b   :  { %v1620_v43 = vmul.f32 %v2841_v26, %v2827_v13  ;;  %v1467_v58 = vsel %vm2859_vm5, %v2829_v14, %v1463_v47  ;;  %vm1625_vm13 = vweird.f32 %v2841_v26  ;;  %v1645_v14 = vand.u32 2147483648, %v2831_v18 }
 0xa1c   :  { %v1478_v48 = vadd.f32 %v2833_v7, %v1477_v42  ;;  %v1472_v20 = vsel %vm1469_vm10, %v1471_v60, %v1467_v58  ;;  %vm2883_vm2 = vmor %vm1624_vm12, %vm1625_vm13  ;;  %vm1629_vm5 = vcmp.eq.f32.partialorder %v1628_v5, 8.507059e+37  ;;  %v2073_v42 = vld [vmem:[%s3016_s4 + $0x20] sm:$0xff] }
 0xa1d   :  { %v2843_v32 = vpop.eup %2238  ;;  %v1621_v49 = vsub.f32 1.0, %v1620_v43  ;;  %v1473_v21 = vmul.f32 %v2795_v17, %v1472_v20  ;;  %v1646_v25 = vor.u32 1.1754944e-38, %v1645_v14  ;;  %v2082_v14 = vld [vmem:[%s3020_s8 + $0x20] sm:$0xff] }
 0xa1e   :  { %v1635_v44 = vmul.f32 %v2843_v32, %v2831_v18  ;;  %v1482_v61 = vsel %vm1481_vm9, %v2833_v7, %v1478_v48  ;;  %vm1640_vm14 = vweird.f32 %v2843_v32  ;;  %v1631_v18 = vor.u32 1.1754944e-38, %v1630_v12  ;;  %v2083_v12 = vld [vmem:[%s3020_s8 + $0x28] sm:$0xff] }
 0xa1f   :  { %v1622_v62 = vmul.f32 %v2841_v26, %v1621_v49  ;;  %v1487_v63 = vsel %vm1484_vm11, %v1486_v56, %v1482_v61  ;;  %vm1641_vm4 = vmor %vm1639_vm3, %vm1640_vm14 }
 0xa20   :  { %v1636_v50 = vsub.f32 1.0, %v1635_v44  ;;  %v1488_v23 = vmul.f32 %v2799_v33, %v1487_v63 }
 0xa21   :  { %v1623_v4 = vadd.f32 %v2841_v26, %v1622_v62 }
 0xa22   :  { %v1637_v6 = vmul.f32 %v2843_v32, %v1636_v50 }
 0xa23   :  { %v1627_v13 = vsel %vm2883_vm2, %v2841_v26, %v1623_v4 }
 0xa24   :  { %v1638_v9 = vadd.f32 %v2843_v32, %v1637_v6  ;;  %v1632_v17 = vsel %vm1629_vm5, %v1631_v18, %v1627_v13 }
 0xa25   :  { %v1633_v27 = vmul.f32 %v2803_v41, %v1632_v17 }
 0xa26   :  { %v2131_v51 = vpop.permute.xlu0 %2130  ;;  %v1642_v24 = vsel %vm1641_vm4, %v2843_v32, %v1638_v9 }
 0xa27   :  { %v2133_v10 = vunpack.i.h.bf16 %v2131_v51  ;;  %v2132_v2 = vunpack.i.l.bf16 %v2131_v51  ;;  %v1647_v33 = vsel %vm1644_vm8, %v1646_v25, %v1642_v24 }
 0xa28   :  { %v1648_v28 = vmul.f32 %v2807_v36, %v1647_v33  ;;  %v2076_v36 = vld [vmem:[%s3016_s4 + $0x38] sm:$0xff] }
 0xa29   :  { %1350 = vmatpush.msra.mxu1 %v2132_v2  ;;  %1376 = vmatpush.msra.mxu2 %v2133_v10  ;;  %v2155_v10 = vld [vmem:[%s3017_s5 + $0x1] ss:$0 sm:$0xff] }
 0xa2a   :  { %2059 = vmatmul.msk.f32.vlgmr.msra.gmra.mxu1 %vm99_vm1, %v1313_v46  ;;  %2060 = vmatmul.msk.f32.vlgmr.msra.gmra.mxu2 %vm99_vm1, %v1328_v57 }
 0xa2b   :  { %1759 = vmatpush.msra.mxu0 %v2076_v36 }
 0xa2d   :  { %1760 = vmatpush.msra.mxu0 %v2075_v38 }
 0xa2e   :  { %v2136_v11 = vpop.permute.xlu1 %2135 }
 0xa2f   :  { %v2138_v15 = vunpack.i.h.bf16 %v2136_v11  ;;  %v2137_v16 = vunpack.i.l.bf16 %v2136_v11  ;;  %1761 = vmatpush.msra.mxu0 %v2074_v40  ;;  %v2084_v11 = vld [vmem:[%s3020_s8 + $0x30] sm:$0xff] }
 0xa31   :  { %1510 = vmatpush.msrb.mxu1 %v2137_v16  ;;  %1536 = vmatpush.msrb.mxu2 %v2138_v15 }
 0xa32   :  { %2065 = vmatmul.msk.f32.vlgmr.msrb.gmra.mxu1 %vm99_vm1, %v1473_v21  ;;  %2066 = vmatmul.msk.f32.vlgmr.msrb.gmra.mxu2 %vm99_vm1, %v1488_v23 }
 0xa33   :  { %1670 = vmatpush.msra.mxu1 %v2142_v39  ;;  %1696 = vmatpush.msra.mxu2 %v2143_v3 }
 0xa34   :  { %1762 = vmatpush.msra.mxu0 %v2073_v42 }
 0xa3a   :  { %2071 = vmatmul.msk.f32.vlgmr.msra.gmra.mxu1 %vm99_vm1, %v1633_v27  ;;  %2072 = vmatmul.msk.f32.vlgmr.msra.gmra.mxu2 %vm99_vm1, %v1648_v28  ;;  %v2156_v27 = vld [vmem:[%s3018_s6 + $0x1] ss:$0 sm:$0xff]  ;;  %s1998_s6 = sshll.u32 %s3026_s14, 4  ;;  %s1999_s6 = int_to_ptr.hbm [resolvable:$true] %s1998_s6 }
 0xa7b   :  { %v1218_v30 = vpop.f32.mrf.mxu2 }
 0xa8a   :  { %v1192_v26 = vpop.f32.mrf.mxu1 }
 0xaa7   :  { %v1352_v32 = vpop.f32.mrf.mxu1 }
 0xaa8   :  { %1703 = vrot.lane.b32.xlu0 %v1352_v32, %s3049_s16  ;;  %v2157_v32 = vld [vmem:[%s3019_s7 + $0x1] ss:$0 sm:$0xff] }
 0xaad   :  { %v1378_v34 = vpop.f32.mrf.mxu2 }
 0xaaf   :  { %v1512_v29 = vpop.f32.mrf.mxu1 }
 0xab0   :  { %1705 = vrot.lane.b32.xlu0 %v1378_v34, %s3049_s16  ;;  %1711 = vrot.lane.b32.xlu2 %v1512_v29, %s3050_s23 }
 0xab5   :  { %v1538_v35 = vpop.f32.mrf.mxu2 }
 0xab7   :  { %v1672_v37 = vpop.f32.mrf.mxu1 }
 0xab8   :  { %1713 = vrot.lane.b32.xlu2 %v1538_v35, %s3050_s23  ;;  %1719 = vrot.lane.b32.xlu1 %v1672_v37, %s3051_s24 }
 0xabd   :  { %v1698_v41 = vpop.f32.mrf.mxu2 }
 0xac0   :  { %1721 = vrot.lane.b32.xlu1 %v1698_v41, %s3051_s24 }
 0xb0a   :  { %v1712_v44 = vpop.permute.xlu2 %1711 }
 0xb12   :  { %v1714_v50 = vpop.permute.xlu2 %1713 }
 0xb1a   :  { %v1704_v43 = vpop.permute.xlu0 %1703 }
 0xb1b   :  { %v1725_v45 = vsel %vm99_vm1, %v1192_v26, %v1704_v43  ;;  %v2096_v43 = vld [vmem:[%s3022_s10 + $0x78] sm:$0xff] }
 0xb1c   :  { %v1727_v46 = vsel %vm761_vm6, %v1725_v45, %v1712_v44  ;;  %1915 = vmatpush.msrb.mxu1 %v2096_v43  ;;  %v2095_v44 = vld [vmem:[%s3022_s10 + $0x70] sm:$0xff]  ;;  %v2094_v45 = vld [vmem:[%s3022_s10 + $0x68] sm:$0xff] }
 0xb1e   :  { %1916 = vmatpush.msrb.mxu1 %v2095_v44  ;;  %v2160_v44 = vld [vmem:[%s3024_s12 + $0x1] ss:$0 sm:$0xff]  ;;  %s2295_s12 = smov [#allocation2]  }
 0xb1f   :  { %s1996_s15 = sshll.u32 %s2295_s12, 4  ;;  %s1997_s15 = int_to_ptr.vmem [resolvable:$true] %s1996_s15 }
 0xb20   :  { %1917 = vmatpush.msrb.mxu1 %v2094_v45 }
 0xb22   :  { %v1706_v48 = vpop.permute.xlu0 %1705 }
 0xb23   :  { %v1726_v49 = vsel %vm99_vm1, %v1218_v30, %v1706_v48  ;;  %v2090_v48 = vld [vmem:[%s3022_s10 + $0x48] sm:$0xff] }
 0xb24   :  { %v1728_v52 = vsel %vm761_vm6, %v1726_v49, %v1714_v50  ;;  %v2089_v49 = vld [vmem:[%s3022_s10 + $0x40] sm:$0xff] }
 0xb25   :  { %v2158_v50 = vld [vmem:[%s3021_s9 + $0x1] ss:$0 sm:$0xff] }
 0xb2a   :  { %v1720_v22 = vpop.permute.xlu1 %1719 }
 0xb2b   :  { %v1729_v47 = vsel %vm764_vm7, %v1727_v46, %v1720_v22  ;;  %v2093_v46 = vld [vmem:[%s3022_s10 + $0x60] sm:$0xff]  ;;  %v2092_v22 = vld [vmem:[%s3022_s10 + $0x58] sm:$0xff] }
 0xb2c   :  { %2078 = vmatmul.msk.f32.vlgmr.msra.gmra.mxu0 %vm66_vm0, %v1729_v47  ;;  %1918 = vmatpush.msrb.mxu1 %v2093_v46  ;;  %v2091_v47 = vld [vmem:[%s3022_s10 + $0x50] sm:$0xff] }
 0xb2e   :  { %1919 = vmatpush.msrb.mxu1 %v2092_v22  ;;  %v2161_v22 = vld [vmem:[%s3025_s13 + $0x1] ss:$0 sm:$0xff]  ;;  %s2296_s13 = smov 128  }
 0xb30   :  { %1920 = vmatpush.msrb.mxu1 %v2091_v47 }
 0xb32   :  { %v1722_v51 = vpop.permute.xlu1 %1721  ;;  %1921 = vmatpush.msrb.mxu1 %v2090_v48 }
 0xb33   :  { %v1730_v53 = vsel %vm764_vm7, %v1728_v52, %v1722_v51 }
 0xb34   :  { %2079 = vmatmul.msk.f32.gmra.mxu0 %vm66_vm0, %v1730_v53  ;;  %1922 = vmatpush.msrb.mxu1 %v2089_v49 }
 0xba9   :  { %v1764_v2 = vpop.f32.mrf.mxu0 }
 0xbaa   :  { %v1765_v54 = vadd.f32 %v2155_v10, %v1764_v2 }
 0xbac   :  { %v1770_v8 = vadd.f32 %v1765_v54, %v2698_v59 }
 0xbae   :  { %v1776_v55 = vsel %vm66_vm0, %v1770_v8, 0.0 }
 0xbaf   :  { %1777 = vadd.xlane.f32.xlu0 %v1776_v55 }
 0xbb1   :  { %v1767_v57 = vpop.f32.mrf.mxu0 }
 0xbb2   :  { %v1768_v58 = vadd.f32 %v2155_v10, %v1767_v57 }
 0xbb4   :  { %v1771_v61 = vadd.f32 %v1768_v58, %v2702_v31  ;;  %v2085_v31 = vld [vmem:[%s3020_s8 + $0x38] sm:$0xff] }
 0xbb5   :  { %1858 = vmatpush.msrb.mxu3 %v2085_v31  ;;  %v2159_v31 = vld [vmem:[%s3023_s11 + $0x1] ss:$0 sm:$0xff] }
 0xbb6   :  { %v1779_v62 = vsel %vm66_vm0, %v1771_v61, 0.0 }
 0xbb7   :  { %1780 = vadd.xlane.f32.xlu2 %v1779_v62  ;;  %1859 = vmatpush.msrb.mxu3 %v2084_v11 }
 0xbb9   :  { %1860 = vmatpush.msrb.mxu3 %v2083_v12 }
 0xbbb   :  { %1861 = vmatpush.msrb.mxu3 %v2082_v14 }
 0xc22   :  { %v1778_v6 = vpop.xlane.xlu0 %1777 }
 0xc23   :  { %v1782_v60 = vmul.f32 %v1778_v6, %v2612_v0 }
 0xc25   :  { %v1784_v56 = vsub.f32 %v1770_v8, %v1782_v60 }
 0xc27   :  { %v1786_v20 = vmul.f32 %v1784_v56, %v1784_v56 }
 0xc29   :  { %v1788_v63 = vsel %vm66_vm0, %v1786_v20, 0.0 }
 0xc2a   :  { %1789 = vadd.xlane.f32.xlu1 %v1788_v63  ;;  %v1781_v1 = vpop.xlane.xlu2 %1780 }
 0xc2b   :  { %v1783_v59 = vmul.f32 %v1781_v1, %v2612_v0 }
 0xc2d   :  { %v1785_v4 = vsub.f32 %v1771_v61, %v1783_v59 }
 0xc2f   :  { %v1787_v5 = vmul.f32 %v1785_v4, %v1785_v4 }
 0xc31   :  { %v1791_v9 = vsel %vm66_vm0, %v1787_v5, 0.0 }
 0xc32   :  { %1792 = vadd.xlane.f32.xlu0 %v1791_v9 }
 0xc9d   :  { %v1790_v15 = vpop.xlane.xlu1 %1789 }
 0xc9e   :  { %v1794_v16 = vmul.f32 %v1790_v15, %v2612_v0 }
 0xca0   :  { %v1796_v7 = vadd.f32 1e-12, %v1794_v16 }
 0xca2   :  { %2240 = vrsqrt.f32 %v1796_v7  ;;  %vm1804_vm6 = vweird.f32 %v1796_v7 }
 0xca5   :  { %v1793_v19 = vpop.xlane.xlu0 %1792 }
 0xca6   :  { %v1795_v21 = vmul.f32 %v1793_v19, %v2612_v0 }
 0xca8   :  { %v2241_v23 = vpop.eup %2240  ;;  %v1797_v3 = vadd.f32 1e-12, %v1795_v21 }
 0xca9   :  { %v1799_v39 = vmul.f32 %v2241_v23, %v1796_v7  ;;  %vm1805_vm1 = vweird.f32 %v2241_v23 }
 0xcaa   :  { %2242 = vrsqrt.f32 %v1797_v3  ;;  %vm1806_vm7 = vmor %vm1804_vm6, %vm1805_vm1  ;;  %vm1814_vm10 = vweird.f32 %v1797_v3 }
 0xcab   :  { %v1800_v13 = vmul.f32 %v2241_v23, %v1799_v39 }
 0xcad   :  { %v1801_v24 = vmul.f32 0.5, %v1800_v13 }
 0xcaf   :  { %v1802_v18 = vsub.f32 1.5, %v1801_v24 }
 0xcb0   :  { %v2243_v25 = vpop.eup %2242 }
 0xcb1   :  { %v1803_v17 = vmul.f32 %v2241_v23, %v1802_v18  ;;  %v1809_v33 = vmul.f32 %v2243_v25, %v1797_v3  ;;  %vm1815_vm9 = vweird.f32 %v2243_v25 }
 0xcb2   :  { %vm1816_vm11 = vmor %vm1814_vm10, %vm1815_vm9 }
 0xcb3   :  { %v1807_v28 = vsel %vm1806_vm7, %v2241_v23, %v1803_v17  ;;  %v1810_v26 = vmul.f32 %v2243_v25, %v1809_v33 }
 0xcb4   :  { %v1818_v30 = vmul.f32 %v1807_v28, %v1784_v56 }
 0xcb5   :  { %v1811_v34 = vmul.f32 0.5, %v1810_v26 }
 0xcb6   :  { %v1823_v29 = vmul.f32 %v2156_v27, %v1818_v30 }
 0xcb7   :  { %v1812_v35 = vsub.f32 1.5, %v1811_v34 }
 0xcb8   :  { %v1828_v37 = vadd.f32 %v2157_v32, %v1823_v29 }
 0xcb9   :  { %v1813_v41 = vmul.f32 %v2243_v25, %v1812_v35 }
 0xcba   :  { %2087 = vmatmul.msk.f32.vlgmr.msrb.gmra.mxu3 %vm66_vm0, %v1828_v37 }
 0xcbb   :  { %v1817_v36 = vsel %vm1816_vm11, %v2243_v25, %v1813_v41 }
 0xcbc   :  { %v1819_v38 = vmul.f32 %v1817_v36, %v1785_v4 }
 0xcbe   :  { %v1824_v40 = vmul.f32 %v2156_v27, %v1819_v38 }
 0xcc0   :  { %v1829_v42 = vadd.f32 %v2157_v32, %v1824_v40 }
 0xcc2   :  { %2088 = vmatmul.msk.f32.gmra.mxu3 %vm66_vm0, %v1829_v42 }
 0xd3d   :  { %v1863_v51 = vpop.f32.mrf.mxu3 }
 0xd3e   :  { %v1864_v52 = vadd.f32 %v2158_v50, %v1863_v51 }
 0xd40   :  { %v1869_v53 = vmul.f32 %v1864_v52, %v1864_v52 }
 0xd42   :  { %v1871_v10 = vmul.f32 %v1869_v53, %v1864_v52 }
 0xd44   :  { %v1873_v2 = vmul.f32 0.044715, %v1871_v10 }
 0xd45   :  { %v1866_v54 = vpop.f32.mrf.mxu3 }
 0xd46   :  { %v1875_v8 = vadd.f32 %v1873_v2, %v1864_v52  ;;  %v1867_v55 = vadd.f32 %v2158_v50, %v1866_v54 }
 0xd48   :  { %v1877_v57 = vmul.f32 0.7978846, %v1875_v8  ;;  %v1870_v58 = vmul.f32 %v1867_v55, %v1867_v55 }
 0xd4a   :  { %2244 = vtanh.f32 %v1877_v57  ;;  %v1872_v61 = vmul.f32 %v1870_v58, %v1867_v55 }
 0xd4c   :  { %v1874_v62 = vmul.f32 0.044715, %v1872_v61 }
 0xd4e   :  { %v1876_v6 = vadd.f32 %v1874_v62, %v1867_v55 }
 0xd50   :  { %v2245_v60 = vpop.eup %2244  ;;  %v1878_v56 = vmul.f32 0.7978846, %v1876_v6 }
 0xd51   :  { %v1881_v20 = vadd.f32 1.0, %v2245_v60 }
 0xd52   :  { %2246 = vtanh.f32 %v1878_v56 }
 0xd53   :  { %v1883_v63 = vmul.f32 0.5, %v1881_v20 }
 0xd55   :  { %v1885_v1 = vmul.f32 %v1883_v63, %v1864_v52 }
 0xd57   :  { %2098 = vmatmul.msk.f32.vlgmr.msrb.gmra.mxu1 %vm936_vm15, %v1885_v1 }
 0xd58   :  { %v2247_v59 = vpop.eup %2246 }
 0xd59   :  { %v1882_v4 = vadd.f32 1.0, %v2247_v59 }
 0xd5b   :  { %v1884_v5 = vmul.f32 0.5, %v1882_v4 }
 0xd5d   :  { %v1886_v9 = vmul.f32 %v1884_v5, %v1867_v55 }
 0xd5f   :  { %2099 = vmatmul.msk.f32.gmra.mxu1 %vm936_vm15, %v1886_v9 }
 0xdd4   :  { %v1924_v11 = vpop.f32.mrf.mxu1 }
 0xdd5   :  { %v1925_v12 = vadd.f32 %v2159_v31, %v1924_v11 }
 0xdd7   :  { %v1930_v14 = vadd.f32 %v1925_v12, %v1828_v37 }
 0xdd9   :  { %v1936_v15 = vsel %vm66_vm0, %v1930_v14, 0.0 }
 0xdda   :  { %1937 = vadd.xlane.f32.xlu2 %v1936_v15 }
 0xddc   :  { %v1927_v16 = vpop.f32.mrf.mxu1 }
 0xddd   :  { %v1928_v7 = vadd.f32 %v2159_v31, %v1927_v16 }
 0xddf   :  { %v1931_v19 = vadd.f32 %v1928_v7, %v1829_v42 }
 0xde1   :  { %v1939_v21 = vsel %vm66_vm0, %v1931_v19, 0.0 }
 0xde2   :  { %1940 = vadd.xlane.f32.xlu1 %v1939_v21 }
 0xe4d   :  { %v1938_v23 = vpop.xlane.xlu2 %1937 }
 0xe4e   :  { %v1942_v3 = vmul.f32 %v1938_v23, %v2612_v0 }
 0xe50   :  { %v1944_v39 = vsub.f32 %v1930_v14, %v1942_v3 }
 0xe52   :  { %v1946_v13 = vmul.f32 %v1944_v39, %v1944_v39 }
 0xe54   :  { %v1948_v24 = vsel %vm66_vm0, %v1946_v13, 0.0 }
 0xe55   :  { %v1941_v18 = vpop.xlane.xlu1 %1940  ;;  %1949 = vadd.xlane.f32.xlu0 %v1948_v24 }
 0xe56   :  { %v1943_v25 = vmul.f32 %v1941_v18, %v2612_v0 }
 0xe58   :  { %v1945_v17 = vsub.f32 %v1931_v19, %v1943_v25 }
 0xe5a   :  { %v1947_v33 = vmul.f32 %v1945_v17, %v1945_v17 }
 0xe5c   :  { %v1951_v27 = vsel %vm66_vm0, %v1947_v33, 0.0 }
 0xe5d   :  { %1952 = vadd.xlane.f32.xlu2 %v1951_v27 }
 0xec8   :  { %v1950_v28 = vpop.xlane.xlu0 %1949 }
 0xec9   :  { %v1954_v26 = vmul.f32 %v1950_v28, %v2612_v0 }
 0xecb   :  { %v1956_v30 = vadd.f32 1e-12, %v1954_v26 }
 0xecd   :  { %2248 = vrsqrt.f32 %v1956_v30  ;;  %vm1964_vm12 = vweird.f32 %v1956_v30 }
 0xed0   :  { %v1953_v32 = vpop.xlane.xlu2 %1952 }
 0xed1   :  { %v1955_v34 = vmul.f32 %v1953_v32, %v2612_v0 }
 0xed3   :  { %v2249_v29 = vpop.eup %2248  ;;  %v1957_v35 = vadd.f32 1e-12, %v1955_v34 }
 0xed4   :  { %v1959_v37 = vmul.f32 %v2249_v29, %v1956_v30  ;;  %vm1965_vm15 = vweird.f32 %v2249_v29 }
 0xed5   :  { %2250 = vrsqrt.f32 %v1957_v35  ;;  %vm1966_vm13 = vmor %vm1964_vm12, %vm1965_vm15  ;;  %vm1974_vm2 = vweird.f32 %v1957_v35 }
 0xed6   :  { %v1960_v41 = vmul.f32 %v2249_v29, %v1959_v37 }
 0xed8   :  { %v1961_v36 = vmul.f32 0.5, %v1960_v41 }
 0xeda   :  { %v1962_v38 = vsub.f32 1.5, %v1961_v36 }
 0xedb   :  { %v2251_v40 = vpop.eup %2250 }
 0xedc   :  { %v1963_v42 = vmul.f32 %v2249_v29, %v1962_v38  ;;  %v1969_v43 = vmul.f32 %v2251_v40, %v1957_v35  ;;  %vm1975_vm14 = vweird.f32 %v2251_v40 }
 0xedd   :  { %vm1976_vm3 = vmor %vm1974_vm2, %vm1975_vm14 }
 0xede   :  { %v1967_v45 = vsel %vm1966_vm13, %v2249_v29, %v1963_v42  ;;  %v1970_v46 = vmul.f32 %v2251_v40, %v1969_v43 }
 0xedf   :  { %v1978_v0 = vmul.f32 %v1967_v45, %v1944_v39 }
 0xee0   :  { %v1971_v47 = vmul.f32 0.5, %v1970_v46 }
 0xee1   :  { %v1983_v48 = vmul.f32 %v2160_v44, %v1978_v0 }
 0xee2   :  { %v1972_v49 = vsub.f32 1.5, %v1971_v47 }
 0xee3   :  { %v1988_v50 = vadd.f32 %v2161_v22, %v1983_v48 }
 0xee4   :  { %v1973_v51 = vmul.f32 %v2251_v40, %v1972_v49 }
 0xee5   :  { %1990 = vst.msk [vmem:[#allocation2] sm:$0xff] %vm66_vm0, %v1988_v50 }
 0xee6   :  { %v1977_v52 = vsel %vm1976_vm3, %v2251_v40, %v1973_v51 }
 0xee7   :  { %v1979_v53 = vmul.f32 %v1977_v52, %v1945_v17 }
 0xee9   :  { %v1984_v10 = vmul.f32 %v2160_v44, %v1979_v53 }
 0xeeb   :  { %v1989_v2 = vadd.f32 %v2161_v22, %v1984_v10 }
 0xeed   :  { %1991 = vst.msk [vmem:[#allocation2 + $0x8] sm:$0xff] %vm66_vm0, %v1989_v2 }
 0xeee   :  { %2004 = dma.vmem_to_hbm [thread:$0]  %s1997_s15, 256, %s1999_s6, [#allocation3], %s2296_s13, %s2296_s13, %s3049_s16  }
 0xeef   :  { %2278 = dma.done.wait [#allocation3], 256  }
 0xef0   :  { %2279 = vsyncadd [#allocation3], 4294967040 }
 0xef1   :  { %2009 = vsyncpa [#allocation3], 1 }

</bundles_post_ra>
